<compile_context>
chip_gen: v7x
topology: tpu7x:2x2x1
jax: 0.10.0
libtpu: 0.0.40
codegen_flags: <defaults>
</compile_context>

<pallas_src>
import jax
import jax.numpy as jnp
from jax import lax
from jax.experimental import pallas as pl
from jax.experimental.pallas import tpu as pltpu


def _self_attention_kernel(x_ref, wq_t_ref, w_vk_ref, gamma_ref, o_ref,
                           fT_ref, g_ref, h_ref):
    # x_ref: (C, N) block for the current batch element (batch dim squeezed).
    # o_ref: (C, TILE_N) column tile of the output.
    C, N = x_ref.shape
    C8 = wq_t_ref.shape[1]
    TILE_N = o_ref.shape[1]
    j = pl.program_id(1)

    # --- per batch element: projections once, into VMEM scratch -----------------
    @pl.when(j == 0)
    def _():
        x = x_ref[...]                                              # (C, N)
        # f^T = x^T @ Wq^T computed directly in (N, C8) layout (transposed-LHS
        # dot_general); done once per batch so the per-tile score matmul needs
        # no transpose at all.
        fT_ref[...] = lax.dot_general(
            x, wq_t_ref[...], (((0,), (0,)), ((), ())),
            preferred_element_type=jnp.float32)                     # (N, C8)
        # Fused value+key projection: [Wv; Wk] @ x -> (C + C8, N).
        vk = jnp.dot(w_vk_ref[...], x, preferred_element_type=jnp.float32)
        g_ref[...] = vk[C:, :]                                      # (C8, N)
        # Value rows plus an appended ones row: [h; 1] @ e gives h@e and the
        # softmax denominator in a single MXU pass.  bf16 feed for the MXU.
        h_ref[...] = jnp.concatenate(
            [vk[:C, :], jnp.ones((1, N), jnp.float32)], axis=0
        ).astype(jnp.bfloat16)                                      # (C+1, N)

    # --- per column tile ---------------------------------------------------------
    col0 = pl.multiple_of(j * TILE_N, TILE_N)
    x_tile = x_ref[:, pl.ds(col0, TILE_N)]                          # (C,  TILE_N)
    g_tile = g_ref[:, pl.ds(col0, TILE_N)]                          # (C8, TILE_N)

    # scores s[i, jj] = sum_k f[k, i] g[k, jj]  ==  f^T @ g_tile
    s = jnp.dot(fT_ref[...], g_tile,
                preferred_element_type=jnp.float32)                 # (N, TILE_N)

    # softmax over axis 0 (rows) == torch softmax(dim=1) on the (B, N, N) scores.
    m = jnp.max(s, axis=0, keepdims=True)                           # (1, TILE_N)
    e = jnp.exp(s - m).astype(jnp.bfloat16)                         # (N, TILE_N)

    # [h; 1] @ e  ->  rows 0..C-1: h @ e ;  row C: softmax denominator.
    hv_aug = jnp.dot(h_ref[...], e,
                     preferred_element_type=jnp.float32)            # (C+1, TILE_N)
    hv = hv_aug[:C, :]                                              # (C, TILE_N)
    denom = hv_aug[C:, :]                                           # (1, TILE_N)

    inv = pl.reciprocal(denom, approx=False)                        # exact 1/denom
    gamma = gamma_ref[0]                                            # scalar (SMEM)
    o_ref[...] = (gamma * hv * inv + x_tile.astype(jnp.float32)).astype(o_ref.dtype)


def _pick_tile_n(N, score_tile_budget_bytes=8 << 20):
    """Largest column tile (multiple of 128 dividing N) whose f32 score slab fits budget."""
    if N % 128 != 0:
        return N                       # fall back to a full-extent (untiled) block
    cand = score_tile_budget_bytes // (4 * N)
    cand = min(N, max(128, (cand // 128) * 128))
    while N % cand != 0:
        cand -= 128
    return cand


def _derived_vmem_limit(C, C8, N, TILE_N, x_itemsize, w_itemsize):
    """VMEM limit derived from actual shapes, clamped to the chip's physical VMEM."""
    def rup(v, m):
        return ((v + m - 1) // m) * m

    scratch = (
        N * rup(C8, 128) * 4                 # f^T (f32, lane-padded)
        + rup(C8, 8) * N * 4                 # g   (f32)
        + rup(C + 1, 16) * N * 2             # [h; 1] (bf16)
    )
    blocks = (
        2 * C * N * x_itemsize               # x block, double-buffered
        + 2 * C * TILE_N * x_itemsize        # out block, double-buffered
        + 2 * (C * rup(C8, 128) + (C + C8) * rup(C, 128)) * w_itemsize
    )
    working = (
        N * TILE_N * 4                       # scores (f32)
        + N * TILE_N * 2                     # exp   (bf16)
        + (C + C8 + 8) * N * 4               # fused projection temp at j == 0
        + 6 * C * TILE_N * 4                 # hv / residual / misc temporaries
    )
    need = int(1.4 * (scratch + blocks + working)) + (4 << 20)

    cap = 100 << 20                          # v5e / v6e headroom (128 MiB physical)
    try:                                     # v7x: only 64 MiB physical VMEM
        cap = min(cap, int(pltpu.get_tpu_info().vmem_capacity_bytes * 0.9))
    except Exception:
        pass
    return max(min(need, cap), min(32 << 20, cap))


def self_attention(x, wq, wk, wv, gamma, *, tile_n=None, vmem_limit_bytes=None):
    """Pallas implementation of SelfAttention.forward.

    x:     (B, C, H, W)
    wq/wk: (C//8, C)   -- query/key 1x1-conv weights (squeezed)
    wv:    (C, C)      -- value 1x1-conv weight (squeezed)
    gamma: (1,)        -- learnable residual scale
    returns o with the same shape as x.
    """
    B, C, Hs, Ws = x.shape
    N = Hs * Ws
    C8 = wq.shape[0]
    assert C8 >= 1
    assert wq.shape == (C8, C) and wk.shape == (C8, C) and wv.shape == (C, C)
    assert gamma.shape == (1,)

    x2 = x.reshape(B, C, N)                     # spatial axis N stays lane-dense
    wq_t = jnp.transpose(wq)                    # (C, C8): host-side, free
    w_vk = jnp.concatenate([wv, wk], axis=0)    # (C + C8, C): fused value+key weight

    TILE_N = int(tile_n) if tile_n is not None else _pick_tile_n(N)
    assert N % TILE_N == 0
    nj = N // TILE_N

    if vmem_limit_bytes is None:
        vmem_limit_bytes = _derived_vmem_limit(
            C, C8, N, TILE_N, x2.dtype.itemsize, wq.dtype.itemsize)

    flops = B * (
        2 * N * C * (2 * C8 + C)        # q/k/v projections
        + 2 * N * N * C8                # f^T @ g
        + 2 * N * N * (C + 1)           # [h; 1] @ e (value matmul + denominator row)
        + 5 * N * N                     # softmax elementwise (max/sub/scale)
        + 4 * C * N                     # gamma / 1-over-denom scale + residual add
    )
    transcendentals = B * (N * N + N)   # exp + reciprocal
    bytes_accessed = (
        2 * x2.size * x2.dtype.itemsize                       # read x, write o
        + (wq_t.size + w_vk.size) * wq.dtype.itemsize
        + gamma.size * gamma.dtype.itemsize
    )

    out = pl.pallas_call(
        _self_attention_kernel,
        out_shape=jax.ShapeDtypeStruct((B, C, N), x.dtype),
        grid=(B, nj),
        in_specs=[
            pl.BlockSpec((None, C, N), lambda b, j: (b, 0, 0)),    # x[b], resident over j
            pl.BlockSpec((C, C8), lambda b, j: (0, 0)),            # Wq^T (resident)
            pl.BlockSpec((C + C8, C), lambda b, j: (0, 0)),        # [Wv; Wk] (resident)
            pl.BlockSpec(memory_space=pltpu.MemorySpace.SMEM),     # gamma scalar
        ],
        out_specs=pl.BlockSpec((None, C, TILE_N), lambda b, j: (b, 0, j)),
        scratch_shapes=[
            pltpu.VMEM((N, C8), jnp.float32),        # f^T
            pltpu.VMEM((C8, N), jnp.float32),        # g
            pltpu.VMEM((C + 1, N), jnp.bfloat16),    # [h; ones]
        ],
        compiler_params=pltpu.CompilerParams(
            # j-axis carries scratch computed at j == 0, so it must be "arbitrary";
            # the batch axis is "parallel" (megacore / v7x dual-TC sharding).
            dimension_semantics=("parallel", "arbitrary"),
            vmem_limit_bytes=int(vmem_limit_bytes),
        ),
        cost_estimate=pl.CostEstimate(
            flops=flops,
            transcendentals=transcendentals,
            bytes_accessed=bytes_accessed,
        ),
    )(x2, wq_t, w_vk, gamma)

    return out.reshape(B, C, Hs, Ws)


def _reference(x, wq, wk, wv, gamma):
    B, C, Hs, Ws = x.shape
    xb = x.reshape(B, C, Hs * Ws)
    f = jnp.einsum("oc,bcn->bon", wq, xb)
    g = jnp.einsum("oc,bcn->bon", wk, xb)
    h = jnp.einsum("oc,bcn->bon", wv, xb)
    s = jnp.einsum("bki,bkj->bij", f, g)            # (B, N, N)
    beta = jax.nn.softmax(s, axis=1)                # softmax over i (torch dim=1)
    o = gamma[0] * jnp.einsum("bci,bij->bcj", h, beta) + xb
    return o.reshape(B, C, Hs, Ws)


if __name__ == "__main__":
    # Small shapes consistent with the module: C divisible by 8 (the C//8 query/key
    # width); spatial 16x16 -> N = 256, a multiple of 128 (lane-dense).
    B, C, Hs, Ws = 2, 16, 16, 16
    key = jax.random.PRNGKey(0)
    kx, kq, kk, kv = jax.random.split(key, 4)
    x = jax.random.normal(kx, (B, C, Hs, Ws), dtype=jnp.float32)
    wq = jax.random.normal(kq, (C // 8, C), dtype=jnp.float32) * 0.1
    wk = jax.random.normal(kk, (C // 8, C), dtype=jnp.float32) * 0.1
    wv = jax.random.normal(kv, (C, C), dtype=jnp.float32) * 0.1
    # The module initializes gamma to 0.0; use a nonzero value so the attention
    # path is actually exercised by the check.
    gamma = jnp.array([0.5], dtype=jnp.float32)

    out = self_attention(x, wq, wk, wv, gamma)
    jax.block_until_ready(out)

    ref = _reference(x, wq, wk, wv, gamma)
    assert out.shape == x.shape
    assert jnp.allclose(out, ref, atol=5e-3, rtol=5e-3), float(
        jnp.max(jnp.abs(out - ref))
    )

    print("KERNEL_OK")
</pallas_src>

<mosaic_0001>
module attributes {stable_mosaic.version = 11 : i64} {
  func.func @_self_attention_kernel(%arg0: i32, %arg1: i32, %arg2: memref<1x16x256xf32, #tpu.memory_space<vmem>>, %arg3: memref<16x2xf32, #tpu.memory_space<vmem>>, %arg4: memref<18x16xf32, #tpu.memory_space<vmem>>, %arg5: memref<1xf32, #tpu.memory_space<smem>>, %arg6: memref<1x16x256xf32, #tpu.memory_space<vmem>>, %arg7: memref<256x2xf32, #tpu.memory_space<vmem>>, %arg8: memref<2x256xf32, #tpu.memory_space<vmem>>, %arg9: memref<17x256xbf16, #tpu.memory_space<vmem>>) attributes {dimension_semantics = [#tpu.dimension_semantics<parallel>, #tpu.dimension_semantics<arbitrary>], iteration_bounds = array<i64: 2, 1>, scalar_prefetch = 0 : i64, scratch_operands = 3 : i64, tpu.core_type = #tpu.core_type<tc>, window_params = [{transform_indices = @transform_0, window_bounds = array<i64: 1, 16, 256>}, {pipeline_mode = #tpu.pipeline_mode<synchronous>, transform_indices = @transform_1, window_bounds = array<i64: 16, 2>}, {pipeline_mode = #tpu.pipeline_mode<synchronous>, transform_indices = @transform_2, window_bounds = array<i64: 18, 16>}, {transform_indices = @transform_3, window_bounds = array<i64: 1>}, {transform_indices = @transform_4, window_bounds = array<i64: 1, 16, 256>}]} {
    %c0_i32 = arith.constant 0 : i32
    %0 = arith.cmpi eq, %arg1, %c0_i32 : i32
    %1 = arith.extui %0 : i1 to i32
    %c0_i32_0 = arith.constant 0 : i32
    %2 = arith.cmpi ne, %1, %c0_i32_0 : i32
    scf.if %2 {
      %c0_13 = arith.constant 0 : index
      %c0_14 = arith.constant 0 : index
      %c0_15 = arith.constant 0 : index
      %32 = vector.load %arg2[%c0_13, %c0_14, %c0_15] : memref<1x16x256xf32, #tpu.memory_space<vmem>>, vector<1x16x256xf32>
      %33 = vector.shape_cast %32 : vector<1x16x256xf32> to vector<16x256xf32>
      %c0_16 = arith.constant 0 : index
      %c0_17 = arith.constant 0 : index
      %34 = vector.load %arg3[%c0_16, %c0_17] : memref<16x2xf32, #tpu.memory_space<vmem>>, vector<16x2xf32>
      %cst_18 = arith.constant dense<0.000000e+00> : vector<256x2xf32>
      %35 = tpu.matmul %33, %34, %cst_18 {dimension_numbers = #tpu.dot_dimension_numbers<[0], [0], [1], [1], [0, 1, 1, 1], [], []>} : vector<16x256xf32>, vector<16x2xf32>, vector<256x2xf32> -> vector<256x2xf32>
      %c0_19 = arith.constant 0 : index
      %c0_20 = arith.constant 0 : index
      %36 = vector.load %arg7[%c0_19, %c0_20] : memref<256x2xf32, #tpu.memory_space<vmem>>, vector<256x2xf32>
      tpu.vector_store %arg7[%c0_19, %c0_20], %35 {strides = array<i32>} : memref<256x2xf32, #tpu.memory_space<vmem>>, vector<256x2xf32>,
      %c0_21 = arith.constant 0 : index
      %c0_22 = arith.constant 0 : index
      %37 = vector.load %arg4[%c0_21, %c0_22] : memref<18x16xf32, #tpu.memory_space<vmem>>, vector<18x16xf32>
      %cst_23 = arith.constant dense<0.000000e+00> : vector<18x256xf32>
      %38 = tpu.matmul %37, %33, %cst_23 {dimension_numbers = #tpu.dot_dimension_numbers<[1], [0], [0], [1], [0, 0, 1, 1], [], []>} : vector<18x16xf32>, vector<16x256xf32>, vector<18x256xf32> -> vector<18x256xf32>
      %39 = vector.extract_strided_slice %38 {offsets = [16, 0], sizes = [2, 256], strides = [1, 1]} : vector<18x256xf32> to vector<2x256xf32>
      %c0_24 = arith.constant 0 : index
      %c0_25 = arith.constant 0 : index
      %40 = vector.load %arg8[%c0_24, %c0_25] : memref<2x256xf32, #tpu.memory_space<vmem>>, vector<2x256xf32>
      tpu.vector_store %arg8[%c0_24, %c0_25], %39 {strides = array<i32>} : memref<2x256xf32, #tpu.memory_space<vmem>>, vector<2x256xf32>,
      %41 = vector.extract_strided_slice %38 {offsets = [0, 0], sizes = [16, 256], strides = [1, 1]} : vector<18x256xf32> to vector<16x256xf32>
      %cst_26 = arith.constant 1.000000e+00 : f32
      %42 = vector.broadcast %cst_26 : f32 to vector<1x256xf32>
      %43 = tpu.concatenate %41, %42 in 0 : vector<16x256xf32>, vector<1x256xf32> -> vector<17x256xf32>
      %44 = arith.truncf %43 : vector<17x256xf32> to vector<17x256xbf16>
      %c0_27 = arith.constant 0 : index
      %c0_28 = arith.constant 0 : index
      %45 = vector.load %arg9[%c0_27, %c0_28] : memref<17x256xbf16, #tpu.memory_space<vmem>>, vector<17x256xbf16>
      tpu.vector_store %arg9[%c0_27, %c0_28], %44 {strides = array<i32>} : memref<17x256xbf16, #tpu.memory_space<vmem>>, vector<17x256xbf16>,
    } else {
    }
    %c256_i32 = arith.constant 256 : i32
    %3 = arith.muli %arg1, %c256_i32 : i32
    %4 = tpu.assume_multiple %3, 256 : i32
    %c0 = arith.constant 0 : index
    %c0_1 = arith.constant 0 : index
    %5 = arith.index_cast %4 : i32 to index
    %6 = vector.load %arg2[%c0, %c0_1, %5] : memref<1x16x256xf32, #tpu.memory_space<vmem>>, vector<1x16x256xf32>
    %7 = vector.shape_cast %6 : vector<1x16x256xf32> to vector<16x256xf32>
    %c0_2 = arith.constant 0 : index
    %8 = arith.index_cast %4 : i32 to index
    %9 = vector.load %arg8[%c0_2, %8] : memref<2x256xf32, #tpu.memory_space<vmem>>, vector<2x256xf32>
    %c0_3 = arith.constant 0 : index
    %c0_4 = arith.constant 0 : index
    %10 = vector.load %arg7[%c0_3, %c0_4] : memref<256x2xf32, #tpu.memory_space<vmem>>, vector<256x2xf32>
    %cst = arith.constant dense<0.000000e+00> : vector<256x256xf32>
    %11 = tpu.matmul %10, %9, %cst {dimension_numbers = #tpu.dot_dimension_numbers<[1], [0], [0], [1], [0, 0, 1, 1], [], []>} : vector<256x2xf32>, vector<2x256xf32>, vector<256x256xf32> -> vector<256x256xf32>
    %cst_5 = arith.constant dense<0xFF800000> : vector<256xf32>
    %12 = vector.multi_reduction <maximumf>, %11, %cst_5 [0] : vector<256x256xf32> to vector<256xf32>
    %13 = vector.shape_cast %12 : vector<256xf32> to vector<1x256xf32>
    %14 = vector.broadcast %13 : vector<1x256xf32> to vector<256x256xf32>
    %15 = arith.subf %11, %14 : vector<256x256xf32>
    %16 = math.exp %15 : vector<256x256xf32>
    %17 = arith.truncf %16 : vector<256x256xf32> to vector<256x256xbf16>
    %c0_6 = arith.constant 0 : index
    %c0_7 = arith.constant 0 : index
    %18 = vector.load %arg9[%c0_6, %c0_7] : memref<17x256xbf16, #tpu.memory_space<vmem>>, vector<17x256xbf16>
    %cst_8 = arith.constant dense<0.000000e+00> : vector<17x256xf32>
    %19 = tpu.matmul %18, %17, %cst_8 {dimension_numbers = #tpu.dot_dimension_numbers<[1], [0], [0], [1], [0, 0, 1, 1], [], []>} : vector<17x256xbf16>, vector<256x256xbf16>, vector<17x256xf32> -> vector<17x256xf32>
    %20 = vector.extract_strided_slice %19 {offsets = [0, 0], sizes = [16, 256], strides = [1, 1]} : vector<17x256xf32> to vector<16x256xf32>
    %21 = vector.extract_strided_slice %19 {offsets = [16, 0], sizes = [1, 256], strides = [1, 1]} : vector<17x256xf32> to vector<1x256xf32>
    %22 = tpu.reciprocal %21 : vector<1x256xf32> -> vector<1x256xf32>
    %c0_9 = arith.constant 0 : index
    %23 = memref.load %arg5[%c0_9] : memref<1xf32, #tpu.memory_space<smem>>
    %24 = vector.broadcast %23 : f32 to vector<16x256xf32>
    %25 = arith.mulf %24, %20 : vector<16x256xf32>
    %26 = vector.broadcast %22 : vector<1x256xf32> to vector<16x256xf32>
    %27 = arith.mulf %25, %26 : vector<16x256xf32>
    %28 = arith.addf %27, %7 : vector<16x256xf32>
    %c0_10 = arith.constant 0 : index
    %c0_11 = arith.constant 0 : index
    %c0_12 = arith.constant 0 : index
    %29 = vector.load %arg6[%c0_10, %c0_11, %c0_12] : memref<1x16x256xf32, #tpu.memory_space<vmem>>, vector<1x16x256xf32>
    %30 = vector.shape_cast %29 : vector<1x16x256xf32> to vector<16x256xf32>
    %31 = vector.shape_cast %28 : vector<16x256xf32> to vector<1x16x256xf32>
    tpu.vector_store %arg6[%c0_10, %c0_11, %c0_12], %31 {strides = array<i32>} : memref<1x16x256xf32, #tpu.memory_space<vmem>>, vector<1x16x256xf32>,
    return
  }
  func.func @transform_0(%arg0: i32, %arg1: i32) -> (i32, i32, i32) {
    %c0_i32 = arith.constant 0 : i32
    %c0_i32_0 = arith.constant 0 : i32
    %c0_i32_1 = arith.constant 0 : i32
    return %arg0, %c0_i32, %c0_i32_0 : i32, i32, i32
  }
  func.func @transform_1(%arg0: i32, %arg1: i32) -> (i32, i32) {
    %c0_i32 = arith.constant 0 : i32
    %c0_i32_0 = arith.constant 0 : i32
    %c0_i32_1 = arith.constant 0 : i32
    return %c0_i32, %c0_i32_0 : i32, i32
  }
  func.func @transform_2(%arg0: i32, %arg1: i32) -> (i32, i32) {
    %c0_i32 = arith.constant 0 : i32
    %c0_i32_0 = arith.constant 0 : i32
    %c0_i32_1 = arith.constant 0 : i32
    return %c0_i32, %c0_i32_0 : i32, i32
  }
  func.func @transform_3(%arg0: i32, %arg1: i32) -> i32 {
    %c0_i32 = arith.constant 0 : i32
    %c0_i32_0 = arith.constant 0 : i32
    return %c0_i32 : i32
  }
  func.func @transform_4(%arg0: i32, %arg1: i32) -> (i32, i32, i32) {
    %c0_i32 = arith.constant 0 : i32
    %c0_i32_0 = arith.constant 0 : i32
    return %arg0, %c0_i32, %arg1 : i32, i32, i32
  }
}

</mosaic_0001>

<bundles_post_ra>
// kernel: tpu_custom_call.1
= control target key start
LH: loop header
LB: loop body
LE: loop exit
PB: predicated region body
PF: predicated region fallthrough
CT: control target
= control target key end

     0   :  { %s3123_s0 = inlined_call_operand.hbm [shape: f32[2,16,256], index: 0, kind: input, shape index: {}]   ;;  %s3124_s1 = inlined_call_operand.vmem [shape: f32[16,2], index: 1, kind: input, shape index: {}]   ;;  %s3125_s2 = inlined_call_operand.vmem [shape: f32[18,16], index: 2, kind: input, shape index: {}]   ;;  %s3126_s3 = inlined_call_operand.<no memory space> [shape: f32[1], index: 3, kind: input, shape index: {}]   ;;  %s3127_s4 = inlined_call_operand.hbm [shape: f32[2,16,256], index: 4, kind: output, shape index: {}]  }
   0x1   :  { %9 = sst [smem:[#allocation5]] %s3126_s3 }
   0x2   :  { %10 = vsyncpa [#allocation7], 0 }
   0x3   :  { %12 = vsyncpa [#allocation7 + $0x1], 0 }
   0x4   :  { %13 = vsyncpa [#allocation8], 0 }
   0x5   :  { %15 = vsyncpa [#allocation8 + $0x1], 0  ;;  %s2255_s17 = smov 0   ;;  %s2257_s18 = smov 0  }
   0x6   :  { %s2259_s19 = smov 0   ;;  %s2261_s20 = smov 0  }
   0x7   :  { %s2263_s21 = smov 0   ;;  %s2265_s22 = smov 0  }
   0x8 LB: > { %s1710_s3 = sadd.s32 4294967295, %s2217_s22   ;;  %s1711_s23 = sadd.s32 4294967294, %s2217_s22   ;;  %s2217_s22 = sphi %s2265_s22, %s21_s22   ;;  %s2213_s21 = sphi %s2263_s21, %s3315_s21   ;;  %s2209_s20 = sphi %s2261_s20, %s3314_s20   ;;  %s2205_s19 = sphi %s2259_s19, %s3313_s19   ;;  %s2201_s18 = sphi %s2257_s18, %s3312_s18   ;;  %s2197_s17 = sphi %s2255_s17, %s3311_s17  }
   0x9   : > { %s33_s24 = sadd.s32 1, %s2213_s21  ;;  %s40_s25 = sadd.s32 1, %s2205_s19 }
   0xa   : > { %p35_p0 = scmp.ge.s32.totalorder %s33_s24, 2  ;;  %p47_p1 = scmp.ne.s32.totalorder %s2205_s19, %s2201_s18 }
   0xb   : > { %p48_p2 = scmp.eq.s32.totalorder %s2217_s22, 0  ;;  %p53_p3 = scmp.ne.s32.totalorder %s2201_s18, %s2197_s17 }
   0xc   : > { %s3317_s24 = smov (%p35_p0, %s33_s24), 0  ;;  %p54_p5 = scmp.eq.s32.totalorder %s1710_s3, 0 }
   0xd   : > { %p2296_p4 = por %p48_p2, %p47_p1  ;;  %s37_s27 = ssub.s32 %s2213_s21, %s3317_s24 }
   0xe   : > { %p142_p6 = scmp.eq.s32.totalorder %s1710_s3, 1  ;;  %p38_p7 = scmp.eq.s32.totalorder %s37_s27, 0 }
   0xf   : > { %p2302_p8 = por %p54_p5, %p53_p3  ;;  %p148_p10 = scmp.eq.s32.totalorder %s1711_s23, 1 }
  0x10   : > { %p2306_p9 = por %p142_p6, %p47_p1  ;;  %p1913_p13 = scmp.lt.s32.totalorder %s2217_s22, 2 }
  0x11   : > { %s2311_s30 = scalar_select %p38_p7, %s2205_s19, %s40_s25  }
  0x12   : > { %s3183_s29 = scalar_select %p2306_p9, 1, 0 }
  0x13   : > { %p2313_p11 = por %p148_p10, %p53_p3  ;;  %s177_s6 = sand.u32 1, %s2205_s19  }
  0x14   : > { %s1714_s7 = sshll.u32 %s177_s6, 5  ;;  %s1803_s8 = sshll.u32 %s2213_s21, 9 }
  0x15   : > { %s3184_s5 = scalar_select %p2313_p11, 1, 0 }
  0x16   : > { %s2324_s11 = scalar_lea.hbm %s3123_s0, %s1803_s8  ;;  %s181_s12 = scalar_lea.vmem [#allocation6], %s1714_s7 }
  0x17   : > { %s188_s13 = sshll.u32 %s181_s12, 4  ;;  %p2330_p0 = pnand %p1913_p13, %p2296_p4  ;;  %s2326_s13 = int_to_ptr.vmem [resolvable:$true] %s188_s13 }
  0x18   : > { %s2335_s15 = scalar_lea.sflag [#allocation7], %s177_s6  ;;  %s2105_s16 = scalar_lea.hbm %s2324_s11, 512 }
  0x19   : > { %p2106_p2 = scmp.ne.s32.totalorder %s2324_s11, %s2105_s16  ;;  %p2107_p3 = pneg %p2330_p0 }
  0x1a   : > { %s2110_s25 = scalar_lea.hbm %s3123_s0, 1024  ;;  %p2111_p4 = scmp.lt.u32.totalorder %s2324_s11, %s3123_s0 }
  0x1b   : > { %p2108_p5 = pnand %p2107_p3, %p2106_p2  ;;  %p2112_p7 = scmp.lt.u32.totalorder %s2110_s25, %s2105_s16 }
  0x1c   : > { %p2114_p13 = scmp.lt.u32.totalorder %s2105_s16, %s2324_s11 }
  0x1d   : > { %p2109_p6 = pneg %p2108_p5  ;;  %p2113_p10 = por %p2112_p7, %p2111_p4 }
  0x1f   : > { %p2115_p12 = por %p2114_p13, %p2113_p10 }
  0x21   : > { %p2116_p1 = pnand %p2115_p12, %p2109_p6 }
  0x23   : > { %2119 = shalt.err (!%p2116_p1)
}
  0x24   : > { %s2120_s6 = scalar_lea.vmem %s2326_s13, 512  ;;  %s2219_s7 = smov [#allocation6]  }
  0x25   : > { %p2121_p2 = scmp.ne.s32.totalorder %s2326_s13, %s2120_s6  ;;  %s2125_s8 = sshll.u32 %s2219_s7, 4  ;;  %s2126_s8 = int_to_ptr.vmem [resolvable:$false] %s2125_s8 }
  0x26   : > { %s2127_s9 = scalar_lea.vmem %s2126_s8, 1024  ;;  %p2128_p9 = scmp.lt.s32.totalorder %s2326_s13, %s2126_s8 }
  0x27   : > { %p2123_p5 = pnand %p2121_p2, %p2107_p3  ;;  %p2129_p4 = scmp.lt.s32.totalorder %s2127_s9, %s2120_s6 }
  0x29   : > { %p2124_p11 = pneg %p2123_p5  ;;  %p2130_p7 = por %p2129_p4, %p2128_p9 }
  0x2b   : > { %p2131_p10 = pnand %p2130_p7, %p2124_p11 }
  0x2d   : > { %2134 = shalt.err (!%p2131_p10)
}
  0x2e   : > { %s2220_s10 = smov 256   ;;  %s2221_s12 = smov 16  }
  0x2f   : > { %1908 = dma.hbm_to_vmem [thread:$0]  (!%p2330_p0), %s2324_s11, 512, %s2326_s13, %s2335_s15, %s2220_s10, %s2220_s10, %s2221_s12  }
  0x30   : > { %p196_p12 = scmp.lt.s32.totalorder %s2217_s22, 3  ;;  %p3186_p1 = scmp.ge.s32.totalorder %s2217_s22, 1 }
  0x32   : > { %p197_p3 = pnand %p3186_p1, %p196_p12 }
  0x34   : > { %200 = sbr.rel (%p197_p3) target bundleno = 1117 (0x45d), region = 36 }
  0x3b   : > { %s2367_s16 = sand.u32 1, %s2201_s18  }
  0x3c   : > { %s1718_s3 = sshll.u32 %s2367_s16, 5  ;;  %s203_s23 = scalar_lea.sflag [#allocation7], %s2367_s16 }
  0x3d   : > { %s2373_s25 = scalar_lea.vmem [#allocation6], %s1718_s3 }
  0x3e   : > { %2188 = dma.done.wait (%p2302_p8), %s203_s23, 512  }
  0x3f   : > { %2190 = vsyncadd (%p2302_p8), %s203_s23, 4294966784  ;;  %v2222_v0 = vmov 0.0   ;;  %v236_v1 = vld [vmem:[%s2373_s25] sm:$0xff]  ;;  %v237_v2 = vld [vmem:[%s2373_s25 + $0x8] sm:$0xff]  ;;  %vm306_vm0 = vcmask 130048   ;;  %vm947_vm1 = vcmask 1041408  }
  0x40   : > { %737 = vmatprep.mubr.f32.mxu1 %v2222_v0  ;;  %242 = vxpose.xlu0.b32.start [1/2] (short) %v236_v1, 128  ;;  %v238_v3 = vld [vmem:[%s2373_s25 + $0x10] sm:$0xff]  ;;  %v239_v4 = vld [vmem:[%s2373_s25 + $0x18] sm:$0xff]  ;;  %v240_v7 = vld [vmem:[%s3124_s1] sm:$0xff]  ;;  %vm628_vm2 = vcmask 15360   ;;  %vm787_vm3 = vcmask 1040384   ;;  %vm790_vm6 = vcmask 1044484  }
  0x41   : > { %274 = vxpose.xlu1.b32.start [1/2] (short) %v237_v2, 128  ;;  %v1897_v5 = vpack.c.bf16 %v239_v4, %v237_v2  ;;  %v1899_v6 = vpack.c.bf16 %v238_v3, %v236_v1  ;;  %v241_v8 = vld [vmem:[%s3124_s1 + $0x8] sm:$0xff]  ;;  %v661_v10 = vld [vmem:[%s3125_s2] sm:$0xff]  ;;  %v663_v12 = vld [vmem:[%s3125_s2 + $0x10] sm:$0x3]  ;;  %vm788_vm4 = vsmask.f32 256 }
  0x42   : > { %v1893_v9 = vpack.c.bf16 %v241_v8, %v240_v7  ;;  %v662_v11 = vld [vmem:[%s3125_s2 + $0x8] sm:$0xff]  ;;  %vm789_vm5 = vmand %vm787_vm3, %vm788_vm4  ;;  %vm791_vm7 = vsmask.f32 4352  ;;  %s1580_s9 = sld [smem:[#allocation5]]  ;;  %s1806_s10 = sshll.u32 %s2209_s20, 9 }
  0x43   : > { %1898 = vmatprep.subr.bf16.mxu1 %v1897_v5  ;;  %vm792_vm8 = vmand %vm790_vm6, %vm791_vm7  ;;  %s230_s12 = scalar_lea.vmem [#allocation9], %s1718_s3  ;;  %s3072_s28 = scalar_lea.hbm %s3127_s4, %s1806_s10 }
  0x44   : > { %243 = vxpose.xlu0.b32.end [2/2] (short) %v238_v3, 128  ;;  %1900 = vmatpush1.bf16.msra.mxu1 %v1899_v6  ;;  %vm793_vm9 = vmor %vm792_vm8, %vm789_vm5  ;;  %s1622_s23 = sshll.u32 %s230_s12, 4  ;;  %s1607_s20 = scalar_lea.sflag [#allocation8], %s2367_s16  ;;  %s3074_s23 = int_to_ptr.vmem [resolvable:$true] %s1622_s23 }
  0x45   : > { %275 = vxpose.xlu1.b32.end [2/2] (short) %v239_v4, 128  ;;  %1894 = vmatprep.subr.bf16.mxu0 %v1893_v9  ;;  %s2135_s3 = scalar_lea.vmem %s3074_s23, 512  ;;  %p3308_p9 = scmp.ne.s32.totalorder %s3183_s29, 0 }
  0x46   : > { %1896 = vmatpush3.bf16.msra.mxu0 %v1893_v9  ;;  %p2136_p8 = scmp.ne.s32.totalorder %s3074_s23, %s2135_s3 }
  0x47   : > { %1752 = vmatmul.mubr.msk.f32.vlgmr.msra.gmra.mrb[0].mxu1 %vm306_vm0, %v661_v10 }
  0x48   : > { %743 = vmatprep.mubr.f32.mxu1 %v2222_v0  ;;  %p2137_p11 = pnand %p2136_p8, %p3308_p9 }
  0x4a   : > { %p2138_p0 = pneg %p2137_p11 }
  0x4b   : > { %1753 = vmatmul.mubr.msk.f32.gmra.mrb[2].mxu1 %vm306_vm0, %v662_v11 }
  0x4c   : > { %749 = vmatprep.mubr.f32.mxu1 %v2222_v0 }
  0x4f   : > { %1754 = vmatmul.mubr.msk.f32.gmra.mrb[4].mxu1 %vm306_vm0, %v663_v12 }
  0x50   : > { %1016 = vmatprep.mubr.f32.mxu1 %v2222_v0 }
  0xc0   : > { %v258_v13 = vpop.trf.xlu0 }
  0xc1   : > { %v290_v14 = vpop.trf.xlu1  ;;  %1845 = vmatprep.mubr.msk.f32.mxu0 %vm306_vm0, %v258_v13 }
  0xc4   : > { %v259_v15 = vpop.trf.xlu0 }
  0xc5   : > { %1846 = vmatmul.mubr.msk.f32.vlgmr.msra.gmra.mrb[0].mxu0 %vm306_vm0, %v259_v15  ;;  %v291_v16 = vpop.trf.xlu1 }
  0xc8   : > { %v260_v17 = vpop.trf.xlu0 }
  0xc9   : > { %1848 = vmatprep.mubr.msk.f32.mxu0 %vm306_vm0, %v260_v17  ;;  %v292_v19 = vpop.trf.xlu1 }
  0xcc   : > { %v261_v18 = vpop.trf.xlu0 }
  0xcd   : > { %1849 = vmatmul.mubr.msk.f32.gmra.mrb[2].mxu0 %vm306_vm0, %v261_v18  ;;  %v293_v21 = vpop.trf.xlu1 }
  0xd0   : > { %v262_v20 = vpop.trf.xlu0 }
  0xd1   : > { %1851 = vmatprep.mubr.msk.f32.mxu0 %vm306_vm0, %v262_v20  ;;  %v294_v24 = vpop.trf.xlu1 }
  0xd4   : > { %v263_v22 = vpop.trf.xlu0 }
  0xd5   : > { %1852 = vmatmul.mubr.msk.f32.gmra.mrb[4].mxu0 %vm306_vm0, %v263_v22  ;;  %v295_v26 = vpop.trf.xlu1 }
  0xd8   : > { %v264_v23 = vpop.trf.xlu0 }
  0xd9   : > { %1854 = vmatprep.mubr.msk.f32.mxu0 %vm306_vm0, %v264_v23  ;;  %v296_v29 = vpop.trf.xlu1 }
  0xdc   : > { %v265_v25 = vpop.trf.xlu0 }
  0xdd   : > { %1855 = vmatmul.mubr.msk.f32.gmra.mrb[6].mxu0 %vm306_vm0, %v265_v25  ;;  %v297_v31 = vpop.trf.xlu1 }
  0xe0   : > { %v266_v27 = vpop.trf.xlu0 }
  0xe1   : > { %1857 = vmatprep.mubr.msk.f32.mxu0 %vm306_vm0, %v266_v27  ;;  %v298_v34 = vpop.trf.xlu1 }
  0xe4   : > { %v267_v28 = vpop.trf.xlu0 }
  0xe5   : > { %1858 = vmatmul.mubr.msk.f32.gmra.mrb[8].mxu0 %vm306_vm0, %v267_v28  ;;  %v299_v36 = vpop.trf.xlu1 }
  0xe8   : > { %v268_v30 = vpop.trf.xlu0 }
  0xe9   : > { %1860 = vmatprep.mubr.msk.f32.mxu0 %vm306_vm0, %v268_v30  ;;  %v300_v39 = vpop.trf.xlu1 }
  0xec   : > { %v269_v32 = vpop.trf.xlu0 }
  0xed   : > { %1861 = vmatmul.mubr.msk.f32.gmra.mrb[10].mxu0 %vm306_vm0, %v269_v32  ;;  %v301_v40 = vpop.trf.xlu1 }
  0xf0   : > { %v270_v33 = vpop.trf.xlu0 }
  0xf1   : > { %1863 = vmatprep.mubr.msk.f32.mxu0 %vm306_vm0, %v270_v33  ;;  %v302_v41 = vpop.trf.xlu1 }
  0xf4   : > { %v271_v35 = vpop.trf.xlu0 }
  0xf5   : > { %1864 = vmatmul.mubr.msk.f32.gmra.mrb[12].mxu0 %vm306_vm0, %v271_v35  ;;  %v303_v42 = vpop.trf.xlu1 }
  0xf8   : > { %v272_v37 = vpop.trf.xlu0 }
  0xf9   : > { %1866 = vmatprep.mubr.msk.f32.mxu0 %vm306_vm0, %v272_v37  ;;  %v304_v43 = vpop.trf.xlu1 }
  0xfc   : > { %v273_v38 = vpop.trf.xlu0 }
  0xfd   : > { %1867 = vmatmul.mubr.msk.f32.gmra.mrb[14].mxu0 %vm306_vm0, %v273_v38  ;;  %v305_v44 = vpop.trf.xlu1 }
  0xfe   : > { %1869 = vmatprep.mubr.msk.f32.mxu0 %vm306_vm0, %v290_v14 }
 0x101   : > { %1870 = vmatmul.mubr.msk.f32.gmra.mrb[16].mxu0 %vm306_vm0, %v291_v16 }
 0x102   : > { %1872 = vmatprep.mubr.msk.f32.mxu0 %vm306_vm0, %v292_v19 }
 0x105   : > { %1873 = vmatmul.mubr.msk.f32.gmra.mrb[18].mxu0 %vm306_vm0, %v293_v21 }
 0x106   : > { %1875 = vmatprep.mubr.msk.f32.mxu0 %vm306_vm0, %v294_v24 }
 0x109   : > { %1876 = vmatmul.mubr.msk.f32.gmra.mrb[20].mxu0 %vm306_vm0, %v295_v26 }
 0x10a   : > { %1878 = vmatprep.mubr.msk.f32.mxu0 %vm306_vm0, %v296_v29 }
 0x10d   : > { %1879 = vmatmul.mubr.msk.f32.gmra.mrb[22].mxu0 %vm306_vm0, %v297_v31 }
 0x10e   : > { %1881 = vmatprep.mubr.msk.f32.mxu0 %vm306_vm0, %v298_v34 }
 0x111   : > { %1882 = vmatmul.mubr.msk.f32.gmra.mrb[24].mxu0 %vm306_vm0, %v299_v36 }
 0x112   : > { %1884 = vmatprep.mubr.msk.f32.mxu0 %vm306_vm0, %v300_v39 }
 0x115   : > { %1885 = vmatmul.mubr.msk.f32.gmra.mrb[26].mxu0 %vm306_vm0, %v301_v40 }
 0x116   : > { %1887 = vmatprep.mubr.msk.f32.mxu0 %vm306_vm0, %v302_v41 }
 0x119   : > { %1888 = vmatmul.mubr.msk.f32.gmra.mrb[28].mxu0 %vm306_vm0, %v303_v42 }
 0x11a   : > { %1890 = vmatprep.mubr.msk.f32.mxu0 %vm306_vm0, %v304_v43  ;;  %v2436_v45 = vpop.f32.mrb[0].mxu1 }
 0x11b   : > { %3187 = vst [vmem:[#allocation12_spill] sm:$0xff] %v2436_v45  ;;  %v741_v46 = vpop.f32.mrb[1].mxu1 }
 0x11d   : > { %1891 = vmatmul.mubr.msk.f32.gmra.mrb[30].mxu0 %vm306_vm0, %v305_v44 }
 0x11e   : > { %v2439_v47 = vpop.f32.mrb[2].mxu1 }
 0x11f   : > { %3188 = vst [vmem:[#allocation13_spill] sm:$0xff] %v2439_v47  ;;  %v747_v48 = vpop.f32.mrb[3].mxu1 }
 0x120   : > { %v2104_v51 = vpack.c.bf16 %v747_v48, %v741_v46 }
 0x122   : > { %v751_v49 = vpop.f32.mrb[4].mxu1  ;;  %1559 = vmatprep.mubr.bf16.mxu0 %v2104_v51 }
 0x123   : > { %v753_v52 = vpop.f32.mrb[5].mxu1 }
 0x124   : > { %v758_v53 = vcombine.low %v751_v49, %v753_v52 }
 0x126   : > { %1755 = vst.sshfl [vmem:[#allocation3] sm:$0x33 pattern:$0x76325410] %v758_v53 }
 0x12d   : > { %v1759_v54 = vld.sshfl [vmem:[#allocation3] sm:$0x33 pattern:$0x76325410] }
 0x12e   : > { %v849_v55 = vcombine.high %v1759_v54, %v1759_v54 }
 0x130   : > { %1760 = vmatprep.subr.msk.mxu1 %vm947_vm1, %v849_v55 }
 0x131   : > { %1761 = vmatpush1.msk.msra.mxu1 %vm947_vm1, %v1759_v54 }
 0x198   : > { %v1847_v56 = vpop.f32.mrb[0].mxu0 }
 0x199   : > { %630 = vst.msk [vmem:[#allocation2 + $0x8] sm:$0xff] %vm628_vm2, %v1847_v56  ;;  %v469_v57 = vpop.f32.mrb[1].mxu0 }
 0x19a   : > { %629 = vst.msk [vmem:[#allocation2] sm:$0xff] %vm628_vm2, %v469_v57 }
 0x1a0   : > { %v1850_v58 = vpop.f32.mrb[2].mxu0  ;;  %v810_v61 = vld [vmem:[#allocation2 + $0x8] sm:$0xff] }
 0x1a1   : > { %632 = vst.msk [vmem:[#allocation2 + $0x18] sm:$0xff] %vm628_vm2, %v1850_v58  ;;  %v479_v59 = vpop.f32.mrb[3].mxu0  ;;  %v809_v60 = vld [vmem:[#allocation2] sm:$0xff] }
 0x1a2   : > { %631 = vst.msk [vmem:[#allocation2 + $0x10] sm:$0xff] %vm628_vm2, %v479_v59  ;;  %1762 = vmatmul.mubr.msk.f32.vlgmr.msra.gmra.mrb[6].mxu1 %vm628_vm2, %v809_v60 }
 0x1a3   : > { %1022 = vmatprep.mubr.f32.mxu1 %v2222_v0 }
 0x1a6   : > { %1763 = vmatmul.mubr.msk.f32.gmra.mrb[8].mxu1 %vm628_vm2, %v810_v61 }
 0x1a7   : > { %1028 = vmatprep.mubr.f32.mxu1 %v2222_v0 }
 0x1a8   : > { %v1853_v62 = vpop.f32.mrb[4].mxu0  ;;  %v812_v2 = vld [vmem:[#allocation2 + $0x18] sm:$0xff] }
 0x1a9   : > { %634 = vst.msk [vmem:[#allocation2 + $0x28] sm:$0xff] %vm628_vm2, %v1853_v62  ;;  %v489_v63 = vpop.f32.mrb[5].mxu0  ;;  %v811_v1 = vld [vmem:[#allocation2 + $0x10] sm:$0xff] }
 0x1aa   : > { %633 = vst.msk [vmem:[#allocation2 + $0x20] sm:$0xff] %vm628_vm2, %v489_v63  ;;  %1764 = vmatmul.mubr.msk.f32.gmra.mrb[10].mxu1 %vm628_vm2, %v811_v1 }
 0x1ab   : > { %1034 = vmatprep.mubr.f32.mxu1 %v2222_v0 }
 0x1ae   : > { %1765 = vmatmul.mubr.msk.f32.gmra.mrb[12].mxu1 %vm628_vm2, %v812_v2 }
 0x1af   : > { %1040 = vmatprep.mubr.f32.mxu1 %v2222_v0 }
 0x1b0   : > { %v1856_v3 = vpop.f32.mrb[6].mxu0  ;;  %v814_v6 = vld [vmem:[#allocation2 + $0x28] sm:$0xff] }
 0x1b1   : > { %636 = vst.msk [vmem:[#allocation2 + $0x38] sm:$0xff] %vm628_vm2, %v1856_v3  ;;  %v499_v4 = vpop.f32.mrb[7].mxu0  ;;  %v813_v5 = vld [vmem:[#allocation2 + $0x20] sm:$0xff] }
 0x1b2   : > { %635 = vst.msk [vmem:[#allocation2 + $0x30] sm:$0xff] %vm628_vm2, %v499_v4  ;;  %1766 = vmatmul.mubr.msk.f32.gmra.mrb[14].mxu1 %vm628_vm2, %v813_v5 }
 0x1b3   : > { %1046 = vmatprep.mubr.f32.mxu1 %v2222_v0 }
 0x1b6   : > { %1767 = vmatmul.mubr.msk.f32.gmra.mrb[16].mxu1 %vm628_vm2, %v814_v6 }
 0x1b7   : > { %1052 = vmatprep.mubr.f32.mxu1 %v2222_v0 }
 0x1b8   : > { %v1859_v7 = vpop.f32.mrb[8].mxu0  ;;  %v816_v10 = vld [vmem:[#allocation2 + $0x38] sm:$0xff] }
 0x1b9   : > { %638 = vst.msk [vmem:[#allocation2 + $0x48] sm:$0xff] %vm628_vm2, %v1859_v7  ;;  %v509_v8 = vpop.f32.mrb[9].mxu0  ;;  %v815_v9 = vld [vmem:[#allocation2 + $0x30] sm:$0xff] }
 0x1ba   : > { %637 = vst.msk [vmem:[#allocation2 + $0x40] sm:$0xff] %vm628_vm2, %v509_v8  ;;  %1768 = vmatmul.mubr.msk.f32.gmra.mrb[18].mxu1 %vm628_vm2, %v815_v9 }
 0x1bb   : > { %1058 = vmatprep.mubr.f32.mxu1 %v2222_v0 }
 0x1be   : > { %1769 = vmatmul.mubr.msk.f32.gmra.mrb[20].mxu1 %vm628_vm2, %v816_v10 }
 0x1bf   : > { %1064 = vmatprep.mubr.f32.mxu1 %v2222_v0 }
 0x1c0   : > { %v1862_v11 = vpop.f32.mrb[10].mxu0  ;;  %v818_v14 = vld [vmem:[#allocation2 + $0x48] sm:$0xff] }
 0x1c1   : > { %640 = vst.msk [vmem:[#allocation2 + $0x58] sm:$0xff] %vm628_vm2, %v1862_v11  ;;  %v519_v12 = vpop.f32.mrb[11].mxu0  ;;  %v817_v13 = vld [vmem:[#allocation2 + $0x40] sm:$0xff] }
 0x1c2   : > { %639 = vst.msk [vmem:[#allocation2 + $0x50] sm:$0xff] %vm628_vm2, %v519_v12  ;;  %1770 = vmatmul.mubr.msk.f32.gmra.mrb[22].mxu1 %vm628_vm2, %v817_v13 }
 0x1c3   : > { %1070 = vmatprep.mubr.f32.mxu1 %v2222_v0 }
 0x1c6   : > { %1771 = vmatmul.mubr.msk.f32.gmra.mrb[24].mxu1 %vm628_vm2, %v818_v14 }
 0x1c7   : > { %1076 = vmatprep.mubr.f32.mxu1 %v2222_v0 }
 0x1c8   : > { %v1865_v15 = vpop.f32.mrb[12].mxu0  ;;  %v820_v18 = vld [vmem:[#allocation2 + $0x58] sm:$0xff] }
 0x1c9   : > { %642 = vst.msk [vmem:[#allocation2 + $0x68] sm:$0xff] %vm628_vm2, %v1865_v15  ;;  %v529_v16 = vpop.f32.mrb[13].mxu0  ;;  %v819_v17 = vld [vmem:[#allocation2 + $0x50] sm:$0xff] }
 0x1ca   : > { %641 = vst.msk [vmem:[#allocation2 + $0x60] sm:$0xff] %vm628_vm2, %v529_v16  ;;  %1772 = vmatmul.mubr.msk.f32.gmra.mrb[26].mxu1 %vm628_vm2, %v819_v17 }
 0x1cb   : > { %1082 = vmatprep.mubr.f32.mxu1 %v2222_v0 }
 0x1ce   : > { %1773 = vmatmul.mubr.msk.f32.gmra.mrb[28].mxu1 %vm628_vm2, %v820_v18 }
 0x1cf   : > { %1088 = vmatprep.mubr.f32.mxu1 %v2222_v0 }
 0x1d0   : > { %v1868_v19 = vpop.f32.mrb[14].mxu0  ;;  %v822_v23 = vld [vmem:[#allocation2 + $0x68] sm:$0xff] }
 0x1d1   : > { %644 = vst.msk [vmem:[#allocation2 + $0x78] sm:$0xff] %vm628_vm2, %v1868_v19  ;;  %v539_v20 = vpop.f32.mrb[15].mxu0  ;;  %v821_v21 = vld [vmem:[#allocation2 + $0x60] sm:$0xff] }
 0x1d2   : > { %643 = vst.msk [vmem:[#allocation2 + $0x70] sm:$0xff] %vm628_vm2, %v539_v20  ;;  %1774 = vmatmul.mubr.msk.f32.gmra.mrb[30].mxu1 %vm628_vm2, %v821_v21 }
 0x1d3   : > { %1094 = vmatprep.mubr.f32.mxu1 %v2222_v0 }
 0x1d4   : > { %v1871_v22 = vpop.f32.mrb[16].mxu0 }
 0x1d5   : > { %646 = vst.msk [vmem:[#allocation2 + $0x88] sm:$0xff] %vm628_vm2, %v1871_v22  ;;  %v549_v24 = vpop.f32.mrb[17].mxu0 }
 0x1d6   : > { %1775 = vmatmul.mubr.msk.f32.gmra.mrb[32].mxu1 %vm628_vm2, %v822_v23  ;;  %645 = vst.msk [vmem:[#allocation2 + $0x80] sm:$0xff] %vm628_vm2, %v549_v24 }
 0x1d7   : > { %1100 = vmatprep.mubr.f32.mxu1 %v2222_v0 }
 0x1d8   : > { %v1874_v25 = vpop.f32.mrb[18].mxu0  ;;  %v824_v29 = vld [vmem:[#allocation2 + $0x78] sm:$0xff] }
 0x1d9   : > { %v823_v26 = vld [vmem:[#allocation2 + $0x70] sm:$0xff]  ;;  %648 = vst.msk [vmem:[#allocation2 + $0x98] sm:$0xff] %vm628_vm2, %v1874_v25  ;;  %v559_v27 = vpop.f32.mrb[19].mxu0 }
 0x1da   : > { %1776 = vmatmul.mubr.msk.f32.gmra.mrb[34].mxu1 %vm628_vm2, %v823_v26  ;;  %647 = vst.msk [vmem:[#allocation2 + $0x90] sm:$0xff] %vm628_vm2, %v559_v27 }
 0x1db   : > { %1106 = vmatprep.mubr.f32.mxu1 %v2222_v0 }
 0x1dc   : > { %v1877_v28 = vpop.f32.mrb[20].mxu0  ;;  %v826_v35 = vld [vmem:[#allocation2 + $0x88] sm:$0xff] }
 0x1dd   : > { %650 = vst.msk [vmem:[#allocation2 + $0xa8] sm:$0xff] %vm628_vm2, %v1877_v28  ;;  %v569_v30 = vpop.f32.mrb[21].mxu0  ;;  %v825_v31 = vld [vmem:[#allocation2 + $0x80] sm:$0xff] }
 0x1de   : > { %1777 = vmatmul.mubr.msk.f32.gmra.mrb[36].mxu1 %vm628_vm2, %v824_v29  ;;  %649 = vst.msk [vmem:[#allocation2 + $0xa0] sm:$0xff] %vm628_vm2, %v569_v30 }
 0x1df   : > { %1112 = vmatprep.mubr.f32.mxu1 %v2222_v0 }
 0x1e0   : > { %v1880_v32 = vpop.f32.mrb[22].mxu0  ;;  %v828_v41 = vld [vmem:[#allocation2 + $0x98] sm:$0xff] }
 0x1e1   : > { %652 = vst.msk [vmem:[#allocation2 + $0xb8] sm:$0xff] %vm628_vm2, %v1880_v32  ;;  %v579_v33 = vpop.f32.mrb[23].mxu0  ;;  %v827_v37 = vld [vmem:[#allocation2 + $0x90] sm:$0xff] }
 0x1e2   : > { %1778 = vmatmul.mubr.msk.f32.gmra.mrb[38].mxu1 %vm628_vm2, %v825_v31  ;;  %651 = vst.msk [vmem:[#allocation2 + $0xb0] sm:$0xff] %vm628_vm2, %v579_v33 }
 0x1e3   : > { %1118 = vmatprep.mubr.f32.mxu1 %v2222_v0 }
 0x1e4   : > { %v1883_v34 = vpop.f32.mrb[24].mxu0  ;;  %v830_v48 = vld [vmem:[#allocation2 + $0xa8] sm:$0xff] }
 0x1e5   : > { %654 = vst.msk [vmem:[#allocation2 + $0xc8] sm:$0xff] %vm628_vm2, %v1883_v34  ;;  %v589_v36 = vpop.f32.mrb[25].mxu0  ;;  %v829_v43 = vld [vmem:[#allocation2 + $0xa0] sm:$0xff] }
 0x1e6   : > { %1779 = vmatmul.mubr.msk.f32.gmra.mrb[40].mxu1 %vm628_vm2, %v826_v35  ;;  %653 = vst.msk [vmem:[#allocation2 + $0xc0] sm:$0xff] %vm628_vm2, %v589_v36 }
 0x1e7   : > { %1124 = vmatprep.mubr.f32.mxu1 %v2222_v0 }
 0x1e8   : > { %v1886_v38 = vpop.f32.mrb[26].mxu0  ;;  %v832_v51 = vld [vmem:[#allocation2 + $0xb8] sm:$0xff] }
 0x1e9   : > { %656 = vst.msk [vmem:[#allocation2 + $0xd8] sm:$0xff] %vm628_vm2, %v1886_v38  ;;  %v599_v39 = vpop.f32.mrb[27].mxu0  ;;  %v831_v49 = vld [vmem:[#allocation2 + $0xb0] sm:$0xff] }
 0x1ea   : > { %1780 = vmatmul.mubr.msk.f32.gmra.mrb[42].mxu1 %vm628_vm2, %v827_v37  ;;  %655 = vst.msk [vmem:[#allocation2 + $0xd0] sm:$0xff] %vm628_vm2, %v599_v39 }
 0x1eb   : > { %1130 = vmatprep.mubr.f32.mxu1 %v2222_v0 }
 0x1ec   : > { %v1889_v40 = vpop.f32.mrb[28].mxu0  ;;  %v834_v53 = vld [vmem:[#allocation2 + $0xc8] sm:$0xff] }
 0x1ed   : > { %658 = vst.msk [vmem:[#allocation2 + $0xe8] sm:$0xff] %vm628_vm2, %v1889_v40  ;;  %v609_v42 = vpop.f32.mrb[29].mxu0  ;;  %v833_v52 = vld [vmem:[#allocation2 + $0xc0] sm:$0xff] }
 0x1ee   : > { %1781 = vmatmul.mubr.msk.f32.gmra.mrb[44].mxu1 %vm628_vm2, %v828_v41  ;;  %657 = vst.msk [vmem:[#allocation2 + $0xe0] sm:$0xff] %vm628_vm2, %v609_v42 }
 0x1ef   : > { %1136 = vmatprep.mubr.f32.mxu1 %v2222_v0 }
 0x1f0   : > { %v1892_v44 = vpop.f32.mrb[30].mxu0  ;;  %v836_v55 = vld [vmem:[#allocation2 + $0xd8] sm:$0xff] }
 0x1f1   : > { %660 = vst.msk [vmem:[#allocation2 + $0xf8] sm:$0xff] %vm628_vm2, %v1892_v44  ;;  %v619_v46 = vpop.f32.mrb[31].mxu0  ;;  %v835_v54 = vld [vmem:[#allocation2 + $0xd0] sm:$0xff] }
 0x1f2   : > { %1782 = vmatmul.mubr.msk.f32.gmra.mrb[46].mxu1 %vm628_vm2, %v829_v43  ;;  %659 = vst.msk [vmem:[#allocation2 + $0xf0] sm:$0xff] %vm628_vm2, %v619_v46 }
 0x1f3   : > { %1142 = vmatprep.mubr.f32.mxu1 %v2222_v0 }
 0x1f4   : > { %v838_v57 = vld [vmem:[#allocation2 + $0xe8] sm:$0xff] }
 0x1f5   : > { %v837_v56 = vld [vmem:[#allocation2 + $0xe0] sm:$0xff] }
 0x1f6   : > { %1783 = vmatmul.mubr.msk.f32.gmra.mrb[48].mxu1 %vm628_vm2, %v830_v48 }
 0x1f7   : > { %1148 = vmatprep.mubr.f32.mxu1 %v2222_v0 }
 0x1f8   : > { %v840_v59 = vld [vmem:[#allocation2 + $0xf8] sm:$0xff] }
 0x1f9   : > { %v839_v58 = vld [vmem:[#allocation2 + $0xf0] sm:$0xff] }
 0x1fa   : > { %1784 = vmatmul.mubr.msk.f32.gmra.mrb[50].mxu1 %vm628_vm2, %v831_v49 }
 0x1fb   : > { %1154 = vmatprep.mubr.f32.mxu1 %v2222_v0 }
 0x1fe   : > { %1785 = vmatmul.mubr.msk.f32.gmra.mrb[52].mxu1 %vm628_vm2, %v832_v51 }
 0x1ff   : > { %1160 = vmatprep.mubr.f32.mxu1 %v2222_v0 }
 0x202   : > { %1786 = vmatmul.mubr.msk.f32.gmra.mrb[54].mxu1 %vm628_vm2, %v833_v52 }
 0x203   : > { %1166 = vmatprep.mubr.f32.mxu1 %v2222_v0 }
 0x206   : > { %1787 = vmatmul.mubr.msk.f32.gmra.mrb[56].mxu1 %vm628_vm2, %v834_v53 }
 0x207   : > { %1172 = vmatprep.mubr.f32.mxu1 %v2222_v0 }
 0x20a   : > { %1788 = vmatmul.mubr.msk.f32.gmra.mrb[58].mxu1 %vm628_vm2, %v835_v54 }
 0x20b   : > { %1178 = vmatprep.mubr.f32.mxu1 %v2222_v0 }
 0x20e   : > { %1789 = vmatmul.mubr.msk.f32.gmra.mrb[60].mxu1 %vm628_vm2, %v836_v55 }
 0x20f   : > { %1184 = vmatprep.mubr.f32.mxu1 %v2222_v0 }
 0x212   : > { %1790 = vmatmul.mubr.msk.f32.gmra.mrb[62].mxu1 %vm628_vm2, %v837_v56 }
 0x213   : > { %1190 = vmatprep.mubr.f32.mxu1 %v2222_v0 }
 0x216   : > { %1791 = vmatmul.mubr.msk.f32.gmra.mrb[64].mxu1 %vm628_vm2, %v838_v57 }
 0x217   : > { %1196 = vmatprep.mubr.f32.mxu1 %v2222_v0 }
 0x21a   : > { %1792 = vmatmul.mubr.msk.f32.gmra.mrb[66].mxu1 %vm628_vm2, %v839_v58 }
 0x21b   : > { %1202 = vmatprep.mubr.f32.mxu1 %v2222_v0 }
 0x21e   : > { %1793 = vmatmul.mubr.msk.f32.gmra.mrb[68].mxu1 %vm628_vm2, %v840_v59 }
 0x275   : > { %v2538_v60 = vpop.f32.mrb[6].mxu1 }
 0x276   : > { %v2540_v61 = vpop.f32.mrb[7].mxu1 }
 0x279   : > { %v2542_v62 = vpop.f32.mrb[8].mxu1 }
 0x27a   : > { %v2544_v63 = vpop.f32.mrb[9].mxu1 }
 0x27d   : > { %v2546_v1 = vpop.f32.mrb[10].mxu1 }
 0x27e   : > { %v1209_v2 = vmax.f32 %v2538_v60, %v2546_v1  ;;  %v2550_v3 = vpop.f32.mrb[11].mxu1 }
 0x27f   : > { %v1246_v0 = vmax.f32 %v2540_v61, %v2550_v3 }
 0x281   : > { %v2554_v4 = vpop.f32.mrb[12].mxu1 }
 0x282   : > { %v1210_v5 = vmax.f32 %v2542_v62, %v2554_v4  ;;  %v2558_v6 = vpop.f32.mrb[13].mxu1 }
 0x283   : > { %v1247_v7 = vmax.f32 %v2544_v63, %v2558_v6 }
 0x285   : > { %v2562_v8 = vpop.f32.mrb[14].mxu1 }
 0x286   : > { %v1211_v9 = vmax.f32 %v1209_v2, %v2562_v8  ;;  %v2565_v10 = vpop.f32.mrb[15].mxu1 }
 0x287   : > { %v1248_v11 = vmax.f32 %v1246_v0, %v2565_v10 }
 0x289   : > { %v2568_v12 = vpop.f32.mrb[16].mxu1 }
 0x28a   : > { %v1212_v13 = vmax.f32 %v1210_v5, %v2568_v12  ;;  %v2571_v14 = vpop.f32.mrb[17].mxu1 }
 0x28b   : > { %v1249_v15 = vmax.f32 %v1247_v7, %v2571_v14 }
 0x28d   : > { %v2574_v16 = vpop.f32.mrb[18].mxu1 }
 0x28e   : > { %v1213_v17 = vmax.f32 %v1211_v9, %v2574_v16  ;;  %v2577_v18 = vpop.f32.mrb[19].mxu1 }
 0x28f   : > { %v1250_v19 = vmax.f32 %v1248_v11, %v2577_v18 }
 0x291   : > { %v2580_v20 = vpop.f32.mrb[20].mxu1 }
 0x292   : > { %v1214_v21 = vmax.f32 %v1212_v13, %v2580_v20  ;;  %v2583_v22 = vpop.f32.mrb[21].mxu1 }
 0x293   : > { %v1251_v23 = vmax.f32 %v1249_v15, %v2583_v22 }
 0x295   : > { %v2586_v24 = vpop.f32.mrb[22].mxu1 }
 0x296   : > { %v1215_v25 = vmax.f32 %v1213_v17, %v2586_v24  ;;  %v2589_v26 = vpop.f32.mrb[23].mxu1 }
 0x297   : > { %v1252_v27 = vmax.f32 %v1250_v19, %v2589_v26 }
 0x299   : > { %v2592_v28 = vpop.f32.mrb[24].mxu1 }
 0x29a   : > { %v1216_v29 = vmax.f32 %v1214_v21, %v2592_v28  ;;  %v2595_v30 = vpop.f32.mrb[25].mxu1 }
 0x29b   : > { %v1253_v31 = vmax.f32 %v1251_v23, %v2595_v30 }
 0x29d   : > { %v2598_v32 = vpop.f32.mrb[26].mxu1 }
 0x29e   : > { %v1217_v33 = vmax.f32 %v1215_v25, %v2598_v32  ;;  %v2601_v34 = vpop.f32.mrb[27].mxu1 }
 0x29f   : > { %3189 = vst [vmem:[#allocation14_spill] sm:$0xff] %v2601_v34  ;;  %v1254_v35 = vmax.f32 %v1252_v27, %v2601_v34 }
 0x2a1   : > { %v2604_v36 = vpop.f32.mrb[28].mxu1 }
 0x2a2   : > { %v1218_v37 = vmax.f32 %v1216_v29, %v2604_v36  ;;  %v2607_v38 = vpop.f32.mrb[29].mxu1 }
 0x2a3   : > { %3190 = vst [vmem:[#allocation15_spill] sm:$0xff] %v2607_v38  ;;  %v1255_v39 = vmax.f32 %v1253_v31, %v2607_v38 }
 0x2a5   : > { %v2610_v40 = vpop.f32.mrb[30].mxu1 }
 0x2a6   : > { %v1219_v41 = vmax.f32 %v1217_v33, %v2610_v40  ;;  %v2613_v42 = vpop.f32.mrb[31].mxu1 }
 0x2a7   : > { %3191 = vst [vmem:[#allocation16_spill] sm:$0xff] %v2613_v42  ;;  %v1256_v43 = vmax.f32 %v1254_v35, %v2613_v42 }
 0x2a9   : > { %v2616_v44 = vpop.f32.mrb[32].mxu1 }
 0x2aa   : > { %v1220_v46 = vmax.f32 %v1218_v37, %v2616_v44  ;;  %v2619_v48 = vpop.f32.mrb[33].mxu1 }
 0x2ab   : > { %3192 = vst [vmem:[#allocation17_spill] sm:$0xff] %v2619_v48  ;;  %v1257_v49 = vmax.f32 %v1255_v39, %v2619_v48 }
 0x2ad   : > { %v2622_v51 = vpop.f32.mrb[34].mxu1 }
 0x2ae   : > { %v1221_v52 = vmax.f32 %v1219_v41, %v2622_v51  ;;  %v2625_v53 = vpop.f32.mrb[35].mxu1 }
 0x2af   : > { %3193 = vst [vmem:[#allocation18_spill] sm:$0xff] %v2625_v53  ;;  %v1258_v54 = vmax.f32 %v1256_v43, %v2625_v53 }
 0x2b1   : > { %v2628_v55 = vpop.f32.mrb[36].mxu1 }
 0x2b2   : > { %v1222_v56 = vmax.f32 %v1220_v46, %v2628_v55  ;;  %v2631_v57 = vpop.f32.mrb[37].mxu1 }
 0x2b3   : > { %3194 = vst [vmem:[#allocation19_spill] sm:$0xff] %v2631_v57  ;;  %v1259_v58 = vmax.f32 %v1257_v49, %v2631_v57 }
 0x2b5   : > { %v2634_v59 = vpop.f32.mrb[38].mxu1 }
 0x2b6   : > { %v1223_v2 = vmax.f32 %v1221_v52, %v2634_v59  ;;  %v2637_v0 = vpop.f32.mrb[39].mxu1 }
 0x2b7   : > { %3195 = vst [vmem:[#allocation20_spill] sm:$0xff] %v2637_v0  ;;  %v1260_v5 = vmax.f32 %v1258_v54, %v2637_v0 }
 0x2b9   : > { %v2640_v7 = vpop.f32.mrb[40].mxu1 }
 0x2ba   : > { %v1224_v9 = vmax.f32 %v1222_v56, %v2640_v7  ;;  %v2643_v11 = vpop.f32.mrb[41].mxu1 }
 0x2bb   : > { %3196 = vst [vmem:[#allocation21_spill] sm:$0xff] %v2643_v11  ;;  %v1261_v13 = vmax.f32 %v1259_v58, %v2643_v11 }
 0x2bd   : > { %v2646_v15 = vpop.f32.mrb[42].mxu1 }
 0x2be   : > { %v1225_v17 = vmax.f32 %v1223_v2, %v2646_v15  ;;  %v2649_v19 = vpop.f32.mrb[43].mxu1 }
 0x2bf   : > { %3197 = vst [vmem:[#allocation22_spill] sm:$0xff] %v2649_v19  ;;  %v1262_v21 = vmax.f32 %v1260_v5, %v2649_v19 }
 0x2c1   : > { %v2652_v23 = vpop.f32.mrb[44].mxu1 }
 0x2c2   : > { %v1226_v25 = vmax.f32 %v1224_v9, %v2652_v23  ;;  %v2655_v27 = vpop.f32.mrb[45].mxu1 }
 0x2c3   : > { %3198 = vst [vmem:[#allocation23_spill] sm:$0xff] %v2655_v27  ;;  %v1263_v29 = vmax.f32 %v1261_v13, %v2655_v27 }
 0x2c5   : > { %v2658_v31 = vpop.f32.mrb[46].mxu1 }
 0x2c6   : > { %v1227_v33 = vmax.f32 %v1225_v17, %v2658_v31  ;;  %v2661_v35 = vpop.f32.mrb[47].mxu1 }
 0x2c7   : > { %3199 = vst [vmem:[#allocation24_spill] sm:$0xff] %v2661_v35  ;;  %v1264_v37 = vmax.f32 %v1262_v21, %v2661_v35 }
 0x2c9   : > { %v2664_v39 = vpop.f32.mrb[48].mxu1 }
 0x2ca   : > { %v1228_v41 = vmax.f32 %v1226_v25, %v2664_v39  ;;  %v2667_v43 = vpop.f32.mrb[49].mxu1 }
 0x2cb   : > { %3200 = vst [vmem:[#allocation25_spill] sm:$0xff] %v2667_v43  ;;  %v1265_v46 = vmax.f32 %v1263_v29, %v2667_v43 }
 0x2cd   : > { %v2670_v49 = vpop.f32.mrb[50].mxu1 }
 0x2ce   : > { %v1229_v52 = vmax.f32 %v1227_v33, %v2670_v49  ;;  %v2673_v54 = vpop.f32.mrb[51].mxu1 }
 0x2cf   : > { %3201 = vst [vmem:[#allocation26_spill] sm:$0xff] %v2673_v54  ;;  %v1266_v56 = vmax.f32 %v1264_v37, %v2673_v54 }
 0x2d1   : > { %v2676_v58 = vpop.f32.mrb[52].mxu1 }
 0x2d2   : > { %3202 = vst [vmem:[#allocation27_spill] sm:$0xff] %v2676_v58  ;;  %v1230_v2 = vmax.f32 %v1228_v41, %v2676_v58  ;;  %v2679_v5 = vpop.f32.mrb[53].mxu1 }
 0x2d3   : > { %3203 = vst [vmem:[#allocation28_spill] sm:$0xff] %v2679_v5  ;;  %v1267_v9 = vmax.f32 %v1265_v46, %v2679_v5 }
 0x2d5   : > { %v2682_v13 = vpop.f32.mrb[54].mxu1 }
 0x2d6   : > { %3204 = vst [vmem:[#allocation29_spill] sm:$0xff] %v2682_v13  ;;  %v1231_v17 = vmax.f32 %v1229_v52, %v2682_v13  ;;  %v2685_v21 = vpop.f32.mrb[55].mxu1 }
 0x2d7   : > { %3205 = vst [vmem:[#allocation30_spill] sm:$0xff] %v2685_v21  ;;  %v1268_v25 = vmax.f32 %v1266_v56, %v2685_v21 }
 0x2d9   : > { %v2688_v29 = vpop.f32.mrb[56].mxu1 }
 0x2da   : > { %3206 = vst [vmem:[#allocation31_spill] sm:$0xff] %v2688_v29  ;;  %v1232_v33 = vmax.f32 %v1230_v2, %v2688_v29  ;;  %v2691_v37 = vpop.f32.mrb[57].mxu1 }
 0x2db   : > { %3207 = vst [vmem:[#allocation32_spill] sm:$0xff] %v2691_v37  ;;  %v1269_v41 = vmax.f32 %v1267_v9, %v2691_v37 }
 0x2dd   : > { %v2694_v50 = vpop.f32.mrb[58].mxu1 }
 0x2de   : > { %3208 = vst [vmem:[#allocation33_spill] sm:$0xff] %v2694_v50  ;;  %v1233_v46 = vmax.f32 %v1231_v17, %v2694_v50  ;;  %v2697_v45 = vpop.f32.mrb[59].mxu1 }
 0x2df   : > { %3209 = vst [vmem:[#allocation34_spill] sm:$0xff] %v2697_v45  ;;  %v1270_v52 = vmax.f32 %v1268_v25, %v2697_v45 }
 0x2e1   : > { %v2700_v47 = vpop.f32.mrb[60].mxu1 }
 0x2e2   : > { %3210 = vst [vmem:[#allocation35_spill] sm:$0xff] %v2700_v47  ;;  %v1234_v56 = vmax.f32 %v1232_v33, %v2700_v47  ;;  %v2703_v21 = vpop.f32.mrb[61].mxu1 }
 0x2e3   : > { %3211 = vst [vmem:[#allocation36_spill] sm:$0xff] %v2703_v21  ;;  %v1271_v2 = vmax.f32 %v1269_v41, %v2703_v21 }
 0x2e5   : > { %v2706_v5 = vpop.f32.mrb[62].mxu1 }
 0x2e6   : > { %3212 = vst [vmem:[#allocation37_spill] sm:$0xff] %v2706_v5  ;;  %v1235_v9 = vmax.f32 %v1233_v46, %v2706_v5  ;;  %v2709_v37 = vpop.f32.mrb[63].mxu1  ;;  %v2223_v46 = vmov 1.0|1.0  }
 0x2e7   : > { %3213 = vst [vmem:[#allocation38_spill] sm:$0xff] %v2709_v37  ;;  %v1272_v17 = vmax.f32 %v1270_v52, %v2709_v37  ;;  %v1758_v35 = vcombine.low %v2223_v46, %v2223_v46  ;;  %v794_v52 = vld [vmem:[#allocation4 + $0x10] sm:$0x11] }
 0x2e9   : > { %v2712_v54 = vpop.f32.mrb[64].mxu1 }
 0x2ea   : > { %3214 = vst [vmem:[#allocation39_spill] sm:$0xff] %v2712_v54  ;;  %v1236_v25 = vmax.f32 %v1234_v56, %v2712_v54  ;;  %v2715_v45 = vpop.f32.mrb[65].mxu1 }
 0x2eb   : > { %3215 = vst [vmem:[#allocation40_spill] sm:$0xff] %v2715_v45  ;;  %v1273_v33 = vmax.f32 %v1271_v2, %v2715_v45  ;;  %v795_v2 = vsel %vm793_vm9, %v1758_v35, %v794_v52 }
 0x2ec   : > { %796 = vst [vmem:[#allocation4 + $0x10] sm:$0x11] %v795_v2 }
 0x2ed   : > { %v2718_v43 = vpop.f32.mrb[66].mxu1 }
 0x2ee   : > { %3216 = vst [vmem:[#allocation41_spill] sm:$0xff] %v2718_v43  ;;  %v1237_v41 = vmax.f32 %v1235_v9, %v2718_v43  ;;  %v2721_v21 = vpop.f32.mrb[67].mxu1  ;;  %v3236_v52 = vld [vmem:[#allocation38_spill] sm:$0xff] }
 0x2ef   : > { %3217 = vst [vmem:[#allocation42_spill] sm:$0xff] %v2721_v21  ;;  %v1274_v56 = vmax.f32 %v1272_v17, %v2721_v21 }
 0x2f1   : > { %v1204_v37 = vpop.f32.mrb[68].mxu1 }
 0x2f2   : > { %v1238_v45 = vmax.f32 %v1236_v25, %v1204_v37  ;;  %v2724_v27 = vpop.f32.mrb[69].mxu1  ;;  %v3237_v43 = vld [vmem:[#allocation40_spill] sm:$0xff] }
 0x2f3   : > { %v1275_v9 = vmax.f32 %v1273_v33, %v2724_v27 }
 0x2f4   : > { %v1239_v19 = vmax.f32 %v1237_v41, %v1238_v45 }
 0x2f5   : > { %v1276_v11 = vmax.f32 %v1274_v56, %v1275_v9 }
 0x2f6   : > { %v1240_v0 = vrot.slane %v1239_v19, 4  ;;  %v3238_v54 = vld [vmem:[#allocation42_spill] sm:$0xff] }
 0x2f7   : > { %v1277_v46 = vrot.slane %v1276_v11, 4 }
 0x2f8   : > { %v1241_v57 = vmax.f32 %v1239_v19, %v1240_v0 }
 0x2f9   : > { %v1278_v53 = vmax.f32 %v1276_v11, %v1277_v46  ;;  %v3232_v11 = vld [vmem:[#allocation30_spill] sm:$0xff] }
 0x2fa   : > { %v1242_v48 = vrot.slane %v1241_v57, 2 }
 0x2fb   : > { %v1279_v42 = vrot.slane %v1278_v53, 2 }
 0x2fc   : > { %v1243_v38 = vmax.f32 %v1241_v57, %v1242_v48  ;;  %v3227_v57 = vld [vmem:[#allocation23_spill] sm:$0xff]  ;;  %v3229_v48 = vld [vmem:[#allocation25_spill] sm:$0xff] }
 0x2fd   : > { %v1280_v17 = vmax.f32 %v1278_v53, %v1279_v42  ;;  %v3228_v53 = vld [vmem:[#allocation24_spill] sm:$0xff] }
 0x2fe   : > { %v1244_v21 = vrot.slane %v1243_v38, 1 }
 0x2ff   : > { %v1281_v35 = vrot.slane %v1280_v17, 1 }
 0x300   : > { %v2727_v34 = vmax.f32 %v1243_v38, %v1244_v21  ;;  %v3225_v21 = vld [vmem:[#allocation21_spill] sm:$0xff]  ;;  %v3230_v38 = vld [vmem:[#allocation26_spill] sm:$0xff] }
 0x301   : > { %v2764_v46 = vmax.f32 %v1280_v17, %v1281_v35 }
 0x302   : > { %v1345_v25 = vsub.f32 %v1204_v37, %v2727_v34  ;;  %v3239_v5 = vsub.f32 %v2538_v60, %v2727_v34  ;;  %v3240_v50 = vsub.f32 %v2542_v62, %v2727_v34  ;;  %v3241_v29 = vsub.f32 %v2546_v1, %v2727_v34 }
 0x303   : > { %v1346_v35 = vsub.f32 %v2724_v27, %v2764_v46  ;;  %v1284_v33 = vsub.f32 %v2540_v61, %v2764_v46  ;;  %v1286_v41 = vsub.f32 %v2544_v63, %v2764_v46  ;;  %v1288_v56 = vsub.f32 %v2550_v3, %v2764_v46  ;;  %v3222_v61 = vld [vmem:[#allocation18_spill] sm:$0xff]  ;;  %v3223_v63 = vld [vmem:[#allocation19_spill] sm:$0xff]  ;;  %v3224_v3 = vld [vmem:[#allocation20_spill] sm:$0xff] }
 0x304   : > { %v1290_v2 = vsub.f32 %v2558_v6, %v2764_v46  ;;  %v1292_v9 = vsub.f32 %v2565_v10, %v2764_v46  ;;  %v1471_v37 = vmul.f32 1.442695, %v1345_v25  ;;  %v1294_v17 = vsub.f32 %v2571_v14, %v2764_v46  ;;  %v3218_v6 = vld [vmem:[#allocation14_spill] sm:$0xff]  ;;  %v3219_v10 = vld [vmem:[#allocation15_spill] sm:$0xff]  ;;  %v3220_v14 = vld [vmem:[#allocation16_spill] sm:$0xff] }
 0x305   : > { %v1296_v27 = vsub.f32 %v2577_v18, %v2764_v46  ;;  %v1473_v19 = vmul.f32 1.442695, %v1346_v35  ;;  %v3221_v18 = vld [vmem:[#allocation17_spill] sm:$0xff]  ;;  %v3226_v35 = vld [vmem:[#allocation22_spill] sm:$0xff]  ;;  %v3233_v25 = vld [vmem:[#allocation32_spill] sm:$0xff]  ;;  %v3242_v58 = vsub.f32 %v2554_v4, %v2727_v34  ;;  %v3244_v60 = vsub.f32 %v2568_v12, %v2727_v34 }
 0x306   : > { %1971 = vpow2.f32 %v1471_v37  ;;  %v1347_v47 = vmul.f32 1.442695, %v3239_v5  ;;  %v1351_v0 = vmul.f32 1.442695, %v3240_v50  ;;  %v1355_v45 = vmul.f32 1.442695, %v3241_v29 }
 0x307   : > { %1973 = vpow2.f32 %v1473_v19  ;;  %v1359_v13 = vmul.f32 1.442695, %v3242_v58  ;;  %v3243_v37 = vsub.f32 %v2562_v8, %v2727_v34  ;;  %v1367_v5 = vmul.f32 1.442695, %v3244_v60 }
 0x308   : > { %1975 = vpow2.f32 %v1347_v47  ;;  %v3245_v50 = vsub.f32 %v2574_v16, %v2727_v34  ;;  %v3246_v1 = vsub.f32 %v2580_v20, %v2727_v34  ;;  %v3247_v8 = vsub.f32 %v2586_v24, %v2727_v34 }
 0x309   : > { %v1363_v42 = vmul.f32 1.442695, %v3243_v37  ;;  %1977 = vpow2.f32 %v1351_v0  ;;  %v3248_v47 = vsub.f32 %v2592_v28, %v2727_v34  ;;  %v1349_v29 = vmul.f32 1.442695, %v1284_v33 }
 0x30a   : > { %v1371_v62 = vmul.f32 1.442695, %v3245_v50  ;;  %1979 = vpow2.f32 %v1355_v45  ;;  %v1375_v4 = vmul.f32 1.442695, %v3246_v1  ;;  %v1379_v58 = vmul.f32 1.442695, %v3247_v8 }
 0x30b   : > { %1981 = vpow2.f32 %v1359_v13  ;;  %v1383_v12 = vmul.f32 1.442695, %v3248_v47  ;;  %v1353_v45 = vmul.f32 1.442695, %v1286_v41  ;;  %v1357_v13 = vmul.f32 1.442695, %v1288_v56 }
 0x30c   : > { %1983 = vpow2.f32 %v1363_v42  ;;  %v1361_v0 = vmul.f32 1.442695, %v1290_v2  ;;  %v1365_v42 = vmul.f32 1.442695, %v1292_v9  ;;  %v1369_v28 = vmul.f32 1.442695, %v1294_v17 }
 0x30d   : > { %1985 = vpow2.f32 %v1367_v5  ;;  %v1373_v60 = vmul.f32 1.442695, %v1296_v27  ;;  %v3249_v33 = vsub.f32 %v2583_v22, %v2764_v46  ;;  %v3250_v2 = vsub.f32 %v2589_v26, %v2764_v46 }
 0x30e   : > { %1987 = vpow2.f32 %v1371_v62  ;;  %v3251_v17 = vsub.f32 %v2595_v30, %v2764_v46  ;;  %v3252_v22 = vsub.f32 %v2598_v32, %v2727_v34  ;;  %v3253_v26 = vsub.f32 %v3218_v6, %v2764_v46 }
 0x30f   : > { %1989 = vpow2.f32 %v1375_v4  ;;  %v1377_v41 = vmul.f32 1.442695, %v3249_v33  ;;  %v1381_v9 = vmul.f32 1.442695, %v3250_v2  ;;  %v3254_v30 = vsub.f32 %v2604_v36, %v2727_v34 }
 0x310   : > { %v2888_v16 = vpop.eup %1971  ;;  %1991 = vpow2.f32 %v1379_v58  ;;  %v1385_v27 = vmul.f32 1.442695, %v3251_v17  ;;  %v1387_v1 = vmul.f32 1.442695, %v3252_v22  ;;  %v1389_v8 = vmul.f32 1.442695, %v3253_v26 }
 0x311   : > { %v2890_v20 = vpop.eup %1973  ;;  %1993 = vpow2.f32 %v1383_v12  ;;  %v1391_v47 = vmul.f32 1.442695, %v3254_v30  ;;  %v3255_v12 = vsub.f32 %v3219_v10, %v2764_v46  ;;  %v3263_v30 = vsub.f32 %v3223_v63, %v2764_v46 }
 0x312   : > { %v1976_v24 = vpop.eup %1975  ;;  %1995 = vpow2.f32 %v1349_v29 }
 0x313   : > { %v1978_v19 = vpop.eup %1977  ;;  %1997 = vpow2.f32 %v1353_v45  ;;  %v1393_v32 = vmul.f32 1.442695, %v3255_v12 }
 0x314   : > { %v2892_v37 = vpop.eup %1979  ;;  %1999 = vpow2.f32 %v1357_v13  ;;  %v1475_v29 = vpack.c.bf16 %v1978_v19, %v1976_v24  ;;  %v3257_v19 = vsub.f32 %v3220_v14, %v2764_v46 }
 0x315   : > { %v2894_v5 = vpop.eup %1981  ;;  %2001 = vpow2.f32 %v1361_v0 }
 0x316   : > { %v2899_v56 = vpop.eup %1983  ;;  %2003 = vpow2.f32 %v1365_v42  ;;  %v1477_v13 = vpack.c.bf16 %v2894_v5, %v2892_v37  ;;  %v3256_v42 = vsub.f32 %v2610_v40, %v2727_v34  ;;  %v1397_v37 = vmul.f32 1.442695, %v3257_v19 }
 0x317   : > { %v2904_v50 = vpop.eup %1985  ;;  %2005 = vpow2.f32 %v1369_v28  ;;  %v3258_v5 = vsub.f32 %v2616_v44, %v2727_v34  ;;  %v3259_v40 = vsub.f32 %v3221_v18, %v2764_v46  ;;  %v3261_v44 = vsub.f32 %v3222_v61, %v2764_v46 }
 0x318   : > { %v2909_v62 = vpop.eup %1987  ;;  %2007 = vpow2.f32 %v1373_v60  ;;  %v1479_v6 = vpack.c.bf16 %v2904_v50, %v2899_v56  ;;  %v1395_v28 = vmul.f32 1.442695, %v3256_v42  ;;  %v3260_v50 = vsub.f32 %v2622_v51, %v2727_v34 }
 0x319   : > { %v2914_v4 = vpop.eup %1989  ;;  %2009 = vpow2.f32 %v1377_v41  ;;  %v1399_v33 = vmul.f32 1.442695, %v3258_v5  ;;  %v1401_v2 = vmul.f32 1.442695, %v3259_v40  ;;  %v1405_v22 = vmul.f32 1.442695, %v3261_v44 }
 0x31a   : > { %v2919_v58 = vpop.eup %1991  ;;  %2011 = vpow2.f32 %v1381_v9  ;;  %v1481_v0 = vpack.c.bf16 %v2914_v4, %v2909_v62  ;;  %v1403_v17 = vmul.f32 1.442695, %v3260_v50  ;;  %v3262_v18 = vsub.f32 %v2628_v55, %v2727_v34 }
 0x31b   : > { %v2927_v45 = vpop.eup %1993  ;;  %2013 = vpow2.f32 %v1385_v27  ;;  %v3264_v61 = vsub.f32 %v2634_v59, %v2727_v34  ;;  %v3265_v55 = vsub.f32 %v3224_v3, %v2764_v46  ;;  %v3267_v59 = vsub.f32 %v3225_v21, %v2764_v46 }
 0x31c   : > { %v1996_v36 = vpop.eup %1995  ;;  %2015 = vpow2.f32 %v1387_v1  ;;  %v1483_v10 = vpack.c.bf16 %v2927_v45, %v2919_v58  ;;  %v1407_v26 = vmul.f32 1.442695, %v3262_v18  ;;  %v3268_v3 = vsub.f32 %v2646_v15, %v2727_v34 }
 0x31d   : > { %v1998_v24 = vpop.eup %1997  ;;  %2017 = vpow2.f32 %v1389_v8  ;;  %v1413_v42 = vmul.f32 1.442695, %v3265_v55  ;;  %v3271_v15 = vsub.f32 %v3227_v57, %v2764_v46  ;;  %v3274_v57 = vsub.f32 %v2664_v39, %v2727_v34 }
 0x31e   : > { %v2000_v60 = vpop.eup %1999  ;;  %2019 = vpow2.f32 %v1391_v47  ;;  %v1476_v41 = vpack.c.bf16 %v1998_v24, %v1996_v36  ;;  %v1409_v47 = vmul.f32 1.442695, %v3263_v30  ;;  %v3266_v24 = vsub.f32 %v2640_v7, %v2727_v34 }
 0x31f   : > { %v2002_v56 = vpop.eup %2001  ;;  %2021 = vpow2.f32 %v1393_v32  ;;  %v1411_v32 = vmul.f32 1.442695, %v3264_v61  ;;  %v3269_v7 = vsub.f32 %v3226_v35, %v2764_v46  ;;  %v3272_v35 = vsub.f32 %v2658_v31, %v2727_v34 }
 0x320   : > { %v2004_v9 = vpop.eup %2003  ;;  %2023 = vpow2.f32 %v1395_v28  ;;  %1527 = vmatprep.subr.bf16.mxu0 %v1476_v41  ;;  %v1478_v14 = vpack.c.bf16 %v2002_v56, %v2000_v60  ;;  %v1415_v63 = vmul.f32 1.442695, %v3266_v24  ;;  %v1417_v60 = vmul.f32 1.442695, %v3267_v59  ;;  %v3285_v59 = vld [vmem:[#allocation31_spill] sm:$0xff] }
 0x321   : > { %v2006_v27 = vpop.eup %2005  ;;  %2025 = vpow2.f32 %v1397_v37  ;;  %1528 = vmatpush1.bf16.msra.mxu0 %v1475_v29  ;;  %v1421_v41 = vmul.f32 1.442695, %v3269_v7  ;;  %v1431_v18 = vmul.f32 1.442695, %v3274_v57  ;;  %v3276_v62 = vsub.f32 %v2670_v49, %v2727_v34 }
 0x322   : > { %v2008_v1 = vpop.eup %2007  ;;  %2027 = vpow2.f32 %v1399_v33  ;;  %1529 = vmatprep.subr.bf16.mxu0 %v1478_v14  ;;  %v1480_v8 = vpack.c.bf16 %v2006_v27, %v2004_v9  ;;  %v1419_v33 = vmul.f32 1.442695, %v3268_v3  ;;  %v3277_v39 = vsub.f32 %v3230_v38, %v2764_v46 }
 0x323   : > { %v2010_v51 = vpop.eup %2009  ;;  %2029 = vpow2.f32 %v1401_v2  ;;  %v3270_v2 = vsub.f32 %v2652_v23, %v2727_v34  ;;  %v3273_v23 = vsub.f32 %v3228_v53, %v2764_v46  ;;  %v1435_v4 = vmul.f32 1.442695, %v3276_v62 }
 0x324   : > { %v2012_v12 = vpop.eup %2011  ;;  %2031 = vpow2.f32 %v1403_v17  ;;  %v1482_v29 = vpack.c.bf16 %v2010_v51, %v2008_v1  ;;  %v1425_v17 = vmul.f32 1.442695, %v3271_v15  ;;  %v1437_v30 = vmul.f32 1.442695, %v3277_v39 }
 0x325   : > { %v2014_v36 = vpop.eup %2013  ;;  %2033 = vpow2.f32 %v1405_v22  ;;  %1530 = vmatpush1.bf16.msra.mxu0 %v1477_v13  ;;  %v1423_v21 = vmul.f32 1.442695, %v3270_v2  ;;  %v1429_v44 = vmul.f32 1.442695, %v3273_v23  ;;  %v3284_v24 = vsub.f32 %v3232_v11, %v2764_v46  ;;  %v3294_v23 = vld [vmem:[#allocation36_spill] sm:$0xff] }
 0x326   : > { %v2016_v28 = vpop.eup %2015  ;;  %2035 = vpow2.f32 %v1407_v26  ;;  %1531 = vmatprep.subr.bf16.mxu0 %v1480_v8  ;;  %v1484_v19 = vpack.c.bf16 %v2014_v36, %v2012_v12  ;;  %v3275_v8 = vsub.f32 %v3229_v48, %v2764_v46  ;;  %v3278_v48 = vld [vmem:[#allocation27_spill] sm:$0xff]  ;;  %v3280_v36 = vld [vmem:[#allocation28_spill] sm:$0xff] }
 0x327   : > { %v2018_v37 = vpop.eup %2017  ;;  %2037 = vpow2.f32 %v1409_v47  ;;  %v3279_v61 = vsub.f32 %v3278_v48, %v2727_v34  ;;  %v3281_v55 = vsub.f32 %v3280_v36, %v2764_v46  ;;  %v3301_v48 = vsub.f32 %v3237_v43, %v2764_v46 }
 0x328   : > { %v2020_v5 = vpop.eup %2019  ;;  %2039 = vpow2.f32 %v1411_v32  ;;  %v1433_v53 = vmul.f32 1.442695, %v3275_v8  ;;  %v3298_v8 = vsub.f32 %v3236_v52, %v2764_v46  ;;  %v3304_v36 = vsub.f32 %v3238_v54, %v2764_v46 }
 0x329   : > { %v2022_v13 = vpop.eup %2021  ;;  %2041 = vpow2.f32 %v1413_v42  ;;  %1532 = vmatpush1.bf16.msra.mxu0 %v1479_v6  ;;  %v1485_v56 = vpack.c.bf16 %v2020_v5, %v2016_v28  ;;  %v1427_v6 = vmul.f32 1.442695, %v3272_v35  ;;  %v1439_v32 = vmul.f32 1.442695, %v3279_v61  ;;  %v3282_v28 = vld [vmem:[#allocation29_spill] sm:$0xff] }
 0x32a   : > { %v2024_v40 = vpop.eup %2023  ;;  %2043 = vpow2.f32 %v1415_v63  ;;  %1533 = vmatprep.subr.bf16.mxu0 %v1482_v29  ;;  %v1486_v9 = vpack.c.bf16 %v2022_v13, %v2018_v37  ;;  %v1441_v38 = vmul.f32 1.442695, %v3281_v55  ;;  %v3283_v58 = vsub.f32 %v3282_v28, %v2727_v34 }
 0x32b   : > { %v2026_v50 = vpop.eup %2025  ;;  %2045 = vpow2.f32 %v1417_v60  ;;  %v1445_v63 = vmul.f32 1.442695, %v3284_v24  ;;  %v3286_v60 = vsub.f32 %v3285_v59, %v2727_v34  ;;  %v3287_v13 = vsub.f32 %v3233_v25, %v2764_v46 }
 0x32c   : > { %v2028_v14 = vpop.eup %2027  ;;  %2047 = vpow2.f32 %v1419_v33  ;;  %v1443_v45 = vmul.f32 1.442695, %v3283_v58  ;;  %v1465_v61 = vmul.f32 1.442695, %v3301_v48  ;;  %v1469_v55 = vmul.f32 1.442695, %v3304_v36 }
 0x32d   : > { %v2030_v27 = vpop.eup %2029  ;;  %2049 = vpow2.f32 %v1421_v41  ;;  %1534 = vmatpush1.bf16.msra.mxu0 %v1481_v0  ;;  %v1487_v22 = vpack.c.bf16 %v2028_v14, %v2024_v40  ;;  %v1447_v5 = vmul.f32 1.442695, %v3286_v60  ;;  %v1449_v7 = vmul.f32 1.442695, %v3287_v13  ;;  %v3288_v40 = vld [vmem:[#allocation33_spill] sm:$0xff]  ;;  %v3292_v14 = vld [vmem:[#allocation35_spill] sm:$0xff] }
 0x32e   : > { %v2032_v1 = vpop.eup %2031  ;;  %2051 = vpow2.f32 %v1423_v21  ;;  %1535 = vmatprep.subr.bf16.mxu0 %v1484_v19  ;;  %v1488_v31 = vpack.c.bf16 %v2030_v27, %v2026_v50  ;;  %v3289_v11 = vsub.f32 %v3288_v40, %v2727_v34  ;;  %v3290_v21 = vld [vmem:[#allocation34_spill] sm:$0xff]  ;;  %v3293_v35 = vsub.f32 %v3292_v14, %v2727_v34  ;;  %v805_v48 = vld [vmem:[%s2373_s25 + $0x18] sm:$0xff] }
 0x32f   : > { %v2034_v26 = vpop.eup %2033  ;;  %2053 = vpow2.f32 %v1425_v17 }
 0x330   : > { %v2036_v51 = vpop.eup %2035  ;;  %2055 = vpow2.f32 %v1427_v6  ;;  %v1455_v25 = vmul.f32 1.442695, %v3293_v35 }
 0x331   : > { %v2038_v0 = vpop.eup %2037  ;;  %2057 = vpow2.f32 %v1429_v44  ;;  %1536 = vmatpush1.bf16.msra.mxu0 %v1483_v10  ;;  %v1489_v47 = vpack.c.bf16 %v2036_v51, %v2032_v1  ;;  %v3295_v44 = vsub.f32 %v3294_v23, %v2764_v46 }
 0x332   : > { %v2040_v12 = vpop.eup %2039  ;;  %2059 = vpow2.f32 %v1431_v18  ;;  %1537 = vmatprep.subr.bf16.mxu0 %v1486_v9  ;;  %v1490_v49 = vpack.c.bf16 %v2038_v0, %v2034_v26  ;;  %v3291_v9 = vsub.f32 %v3290_v21, %v2764_v46  ;;  %v3296_v18 = vld [vmem:[#allocation37_spill] sm:$0xff] }
 0x333   : > { %v2042_v29 = vpop.eup %2041  ;;  %2061 = vpow2.f32 %v1433_v53  ;;  %v1457_v1 = vmul.f32 1.442695, %v3295_v44  ;;  %v1461_v53 = vmul.f32 1.442695, %v3298_v8  ;;  %v3305_v21 = vld [vmem:[#allocation13_spill] sm:$0xff] }
 0x334   : > { %v2044_v42 = vpop.eup %2043  ;;  %2063 = vpow2.f32 %v1435_v4  ;;  %v1453_v50 = vmul.f32 1.442695, %v3291_v9  ;;  %v3299_v4 = vld [vmem:[#allocation39_spill] sm:$0xff]  ;;  %v3306_v9 = vld [vmem:[#allocation12_spill] sm:$0xff] }
 0x335   : > { %v2046_v10 = vpop.eup %2045  ;;  %2065 = vpow2.f32 %v1437_v30  ;;  %1538 = vmatpush1.bf16.msra.mxu0 %v1485_v56  ;;  %v1491_v19 = vpack.c.bf16 %v2044_v42, %v2040_v12  ;;  %v1451_v56 = vmul.f32 1.442695, %v3289_v11  ;;  %v3300_v0 = vsub.f32 %v3299_v4, %v2727_v34  ;;  %v804_v4 = vld [vmem:[%s2373_s25 + $0x10] sm:$0xff] }
 0x336   : > { %v2048_v37 = vpop.eup %2047  ;;  %2067 = vpow2.f32 %v1439_v32  ;;  %1539 = vmatprep.subr.bf16.mxu0 %v1488_v31  ;;  %v1492_v3 = vpack.c.bf16 %v2046_v10, %v2042_v29  ;;  %v3297_v31 = vsub.f32 %v3296_v18, %v2727_v34 }
 0x337   : > { %v2050_v33 = vpop.eup %2049  ;;  %2069 = vpow2.f32 %v1441_v38  ;;  %v1463_v39 = vmul.f32 1.442695, %v3300_v0 }
 0x338   : > { %v2052_v41 = vpop.eup %2051  ;;  %2071 = vpow2.f32 %v1443_v45 }
 0x339   : > { %v2054_v2 = vpop.eup %2053  ;;  %2073 = vpow2.f32 %v1445_v63  ;;  %1540 = vmatpush1.bf16.msra.mxu0 %v1487_v22  ;;  %v1493_v15 = vpack.c.bf16 %v2052_v41, %v2048_v37  ;;  %v1459_v22 = vmul.f32 1.442695, %v3297_v31 }
 0x33a   : > { %v2056_v17 = vpop.eup %2055  ;;  %2075 = vpow2.f32 %v1447_v5  ;;  %1541 = vmatprep.subr.bf16.mxu0 %v1490_v49  ;;  %v1494_v6 = vpack.c.bf16 %v2054_v2, %v2050_v33  ;;  %v3302_v49 = vld [vmem:[#allocation41_spill] sm:$0xff] }
 0x33b   : > { %v2058_v27 = vpop.eup %2057  ;;  %2077 = vpow2.f32 %v1449_v7  ;;  %v3303_v52 = vsub.f32 %v3302_v49, %v2727_v34 }
 0x33c   : > { %v2060_v57 = vpop.eup %2059  ;;  %2079 = vpow2.f32 %v1451_v56  ;;  %v1509_v56 = vld [vmem:[#allocation4 + $0x10] sm:$0x11] }
 0x33d   : > { %v2062_v26 = vpop.eup %2061  ;;  %2081 = vpow2.f32 %v1453_v50  ;;  %1542 = vmatpush1.bf16.msra.mxu0 %v1489_v47  ;;  %v1495_v51 = vpack.c.bf16 %v2060_v57, %v2056_v17  ;;  %v1467_v47 = vmul.f32 1.442695, %v3303_v52  ;;  %v1797_v2 = vcombine.high %v1509_v56, %v1509_v56 }
 0x33e   : > { %v2064_v62 = vpop.eup %2063  ;;  %2083 = vpow2.f32 %v1455_v25  ;;  %1543 = vmatprep.subr.bf16.mxu0 %v1492_v3  ;;  %v1496_v30 = vpack.c.bf16 %v2062_v26, %v2058_v27  ;;  %v3307_v50 = vpack.c.bf16 %v3305_v21, %v3306_v9  ;;  %v1586_v25 = vlaneseq }
 0x33f   : > { %v2066_v12 = vpop.eup %2065  ;;  %2085 = vpow2.f32 %v1457_v1  ;;  %v1581_v57 = vstv %s1580_s9 }
 0x340   : > { %v2068_v32 = vpop.eup %2067  ;;  %2087 = vpow2.f32 %v1459_v22  ;;  %v1587_v44 = vshrl.u32 %v1586_v25, 7 }
 0x341   : > { %v2070_v29 = vpop.eup %2069  ;;  %2089 = vpow2.f32 %v1461_v53  ;;  %1544 = vmatpush1.bf16.msra.mxu0 %v1491_v19  ;;  %v1497_v38 = vpack.c.bf16 %v2068_v32, %v2064_v62  ;;  %v802_v62 = vld [vmem:[%s2373_s25] sm:$0xff] }
 0x342   : > { %v2072_v42 = vpop.eup %2071  ;;  %2091 = vpow2.f32 %v1463_v39  ;;  %1545 = vmatprep.subr.bf16.mxu0 %v1494_v6  ;;  %v1498_v28 = vpack.c.bf16 %v2070_v29, %v2066_v12  ;;  %v1588_v1 = vsub.s32 0, %v1587_v44  ;;  %v803_v12 = vld [vmem:[%s2373_s25 + $0x8] sm:$0xff]  ;;  %s2224_s25 = smov [#allocation9]  }
 0x343   : > { %v2074_v43 = vpop.eup %2073  ;;  %2093 = vpow2.f32 %v1465_v61  ;;  %s2139_s14 = sshll.u32 %s2224_s25, 4  ;;  %s2140_s14 = int_to_ptr.vmem [resolvable:$false] %s2139_s14 }
 0x344   : > { %v2076_v58 = vpop.eup %2075  ;;  %2095 = vpow2.f32 %v1467_v47  ;;  %s2141_s15 = scalar_lea.vmem %s2140_s14, 1024  ;;  %p2142_p6 = scmp.lt.s32.totalorder %s3074_s23, %s2140_s14 }
 0x345   : > { %v2078_v45 = vpop.eup %2077  ;;  %2097 = vpow2.f32 %v1469_v55  ;;  %1546 = vmatpush1.bf16.msra.mxu0 %v1493_v15  ;;  %v1499_v34 = vpack.c.bf16 %v2076_v58, %v2072_v42  ;;  %v1796_v15 = vcombine.low %v1509_v56, %v1509_v56  ;;  %p2143_p13 = scmp.lt.s32.totalorder %s2141_s15, %s2135_s3 }
 0x346   : > { %v2080_v10 = vpop.eup %2079  ;;  %1547 = vmatprep.subr.bf16.mxu0 %v1496_v30  ;;  %v1500_v24 = vpack.c.bf16 %v2078_v45, %v2074_v43 }
 0x347   : > { %v2082_v63 = vpop.eup %2081  ;;  %p2144_p2 = por %p2143_p13, %p2142_p6 }
 0x348   : > { %v2084_v54 = vpop.eup %2083 }
 0x349   : > { %v2086_v46 = vpop.eup %2085  ;;  %1548 = vmatpush1.bf16.msra.mxu0 %v1495_v51  ;;  %v1501_v19 = vpack.c.bf16 %v2084_v54, %v2080_v10  ;;  %p2145_p5 = pnand %p2144_p2, %p2138_p0 }
 0x34a   : > { %v2088_v37 = vpop.eup %2087  ;;  %1549 = vmatprep.subr.bf16.mxu0 %v1498_v28  ;;  %v1502_v59 = vpack.c.bf16 %v2086_v46, %v2082_v63 }
 0x34b   : > { %v2090_v60 = vpop.eup %2089 }
 0x34c   : > { %v2092_v5 = vpop.eup %2091 }
 0x34d   : > { %v2094_v3 = vpop.eup %2093  ;;  %1550 = vmatpush1.bf16.msra.mxu0 %v1497_v38  ;;  %v1503_v33 = vpack.c.bf16 %v2092_v5, %v2088_v37 }
 0x34e   : > { %v2096_v13 = vpop.eup %2095  ;;  %1551 = vmatprep.subr.bf16.mxu0 %v1500_v24  ;;  %v1504_v7 = vpack.c.bf16 %v2094_v3, %v2090_v60 }
 0x34f   : > { %v2098_v41 = vpop.eup %2097  ;;  %v1505_v40 = vpack.c.bf16 %v2888_v16, %v2096_v13 }
 0x350   : > { %v1506_v11 = vpack.c.bf16 %v2890_v20, %v2098_v41 }
 0x351   : > { %1552 = vmatpush1.bf16.msra.mxu0 %v1499_v34 }
 0x352   : > { %1553 = vmatprep.subr.bf16.mxu0 %v1502_v59 }
 0x355   : > { %1554 = vmatpush1.bf16.msra.mxu0 %v1501_v19 }
 0x356   : > { %1555 = vmatprep.subr.bf16.mxu0 %v1504_v7 }
 0x359   : > { %1556 = vmatpush1.bf16.msra.mxu0 %v1503_v33 }
 0x35a   : > { %1557 = vmatprep.subr.bf16.mxu0 %v1506_v11 }
 0x35d   : > { %1558 = vmatpush1.bf16.msra.mxu0 %v1505_v40 }
 0x360   : > { %1560 = vmatmul.mubr.bf16.vlgmr.msra.gmra.mrb[32].mxu0 %v3307_v50 }
 0x361   : > { %1569 = vmatprep.mubr.bf16.mxu0 %v1797_v2 }
 0x368   : > { %1570 = vmatmul.mubr.bf16.gmra.mrb[36].mxu0 %v1796_v15 }
 0x433   : > { %v1561_v17 = vpop.f32.mrb[32].mxu0 }
 0x434   : > { %v1563_v16 = vpop.f32.mrb[33].mxu0  ;;  %v1582_v22 = vmul.f32 %v1581_v57, %v1561_v17 }
 0x435   : > { %v1565_v14 = vpop.f32.mrb[34].mxu0  ;;  %v1583_v53 = vmul.f32 %v1581_v57, %v1563_v16 }
 0x436   : > { %v1567_v20 = vpop.f32.mrb[35].mxu0  ;;  %v1584_v26 = vmul.f32 %v1581_v57, %v1565_v14 }
 0x437   : > { %v1585_v51 = vmul.f32 %v1581_v57, %v1567_v20 }
 0x43b   : > { %v1571_v35 = vpop.f32.mrb[36].mxu0 }
 0x43c   : > { %2099 = vrcp.f32 %v1571_v35  ;;  %v1573_v6 = vpop.f32.mrb[37].mxu0 }
 0x43d   : > { %2101 = vrcp.f32 %v1573_v6  ;;  %v1575_v27 = vpop.f32.mrb[38].mxu0 }
 0x43e   : > { %v1576_v23 = vpop.f32.mrb[39].mxu0 }
 0x446   : > { %v2100_v18 = vpop.eup %2099 }
 0x447   : > { %v2102_v31 = vpop.eup %2101  ;;  %v1589_v8 = vrot.slane %v2100_v18, %v1588_v1 }
 0x448   : > { %v1593_v0 = vrot.slane %v2102_v31, %v1588_v1 }
 0x449   : > { %v1594_v39 = vmul.f32 %v1589_v8, %v1582_v22  ;;  %v1596_v30 = vmul.f32 %v1589_v8, %v1584_v26 }
 0x44a   : > { %v1595_v61 = vmul.f32 %v1593_v0, %v1583_v53  ;;  %v1597_v32 = vmul.f32 %v1593_v0, %v1585_v51 }
 0x44b   : > { %v1598_v49 = vadd.f32 %v1594_v39, %v802_v62  ;;  %v1600_v52 = vadd.f32 %v1596_v30, %v804_v4 }
 0x44c   : > { %v1599_v47 = vadd.f32 %v1595_v61, %v803_v12  ;;  %v1601_v29 = vadd.f32 %v1597_v32, %v805_v48 }
 0x44d   : > { %1602 = vst [vmem:[%s230_s12] sm:$0xff] %v1598_v49  ;;  %1604 = vst [vmem:[%s230_s12 + $0x10] sm:$0xff] %v1600_v52 }
 0x44e   : > { %1603 = vst [vmem:[%s230_s12 + $0x8] sm:$0xff] %v1599_v47  ;;  %1605 = vst [vmem:[%s230_s12 + $0x18] sm:$0xff] %v1601_v29 }
 0x44f   : > { %2148 = shalt.err (!%p2145_p5)
}
 0x450   : > { %s2149_s26 = scalar_lea.hbm %s3072_s28, 512  ;;  %s2153_s7 = scalar_lea.hbm %s3127_s4, 1024 }
 0x451   : > { %p2150_p4 = scmp.ne.s32.totalorder %s3072_s28, %s2149_s26  ;;  %p2154_p12 = scmp.lt.u32.totalorder %s3072_s28, %s3127_s4 }
 0x452   : > { %p2155_p1 = scmp.lt.u32.totalorder %s2153_s7, %s2149_s26  ;;  %p2157_p8 = scmp.lt.u32.totalorder %s2149_s26, %s3072_s28 }
 0x453   : > { %p2151_p7 = pnand %p2150_p4, %p3308_p9 }
 0x454   : > { %p2156_p3 = por %p2155_p1, %p2154_p12 }
 0x455   : > { %p2152_p10 = pneg %p2151_p7 }
 0x456   : > { %p2158_p11 = por %p2157_p8, %p2156_p3 }
 0x458   : > { %p2159_p0 = pnand %p2158_p11, %p2152_p10 }
 0x45a   : > { %2162 = shalt.err (!%p2159_p0)
}
 0x45b   : > { %s2225_s10 = smov 256   ;;  %s2226_s12 = smov 16  }
 0x45c   : > { %1903 = dma.vmem_to_hbm [thread:$0]  (%p3308_p9), %s3074_s23, 512, %s3072_s28, %s1607_s20, %s2225_s10, %s2225_s10, %s2226_s12  }
 0x45d PF: > { %s1637_s11 = sand.u32 1, %s2197_s17   ;;  %p3309_p6 = scmp.ne.s32.totalorder %s3184_s5, 0 }
 0x45e   : > { %p3310_p13 = scmp.ge.s32.totalorder %s2217_s22, 2  ;;  %s1638_s13 = scalar_lea.sflag [#allocation8], %s1637_s11 }
 0x460   : > { %p1910_p2 = pnand %p3310_p13, %p3309_p6 }
 0x462   : > { %2192 = dma.done.wait (!%p1910_p2), %s1638_s13, 512  }
 0x463   : > { %2194 = vsyncadd (!%p1910_p2), %s1638_s13, 4294966784  ;;  %s21_s22 = sadd.s32 1, %s2217_s22   ;;  %s3311_s17 = smov %s2201_s18 }
 0x464   : > { %p18_p5 = scmp.ge.s32.totalorder %s21_s22, 4   ;;  %s3312_s18 = smov %s2205_s19 }
 0x465   : > { %s3313_s19 = smov %s2311_s30  ;;  %s3314_s20 = smov %s2213_s21 }
 0x466   : > { %s3315_s21 = smov %s3317_s24  ;;  %20 = sbr.rel (!%p18_p5) target bundleno = 8 (0x8), region = 87 }
 0x46d   :  { %1643 = vsyncpa [#allocation7], 1 }
 0x46e   :  { %1645 = vsyncpa [#allocation7 + $0x1], 1 }
 0x46f   :  { %1646 = vsyncpa [#allocation8], 1 }
 0x470   :  { %1648 = vsyncpa [#allocation8 + $0x1], 1 }

</bundles_post_ra>
